<compile_context>
chip_gen: v5e
topology: v5e:2x2
jax: 0.10.0
libtpu: 0.0.40
codegen_flags: <defaults>
</compile_context>

<pallas_src>
import math
import numpy as np
import jax
import jax.numpy as jnp
from jax.experimental import pallas as pl
from jax.experimental.pallas import tpu as pltpu

# Hyper-parameters implied by DTAAD_Callback.__init__ (feats chosen == n_window).
FEATS = 10          # n_feats == nhead  -> head_dim = 1
WINDOW = 10         # n_window (decoder Linear(n_window, 1) forces seq len == 10)
KL = 4              # Tcn_Local kernel_size
KG = 3              # Tcn_Global kernel_size (two convs: dilation 1 and 2)
DFF = 16            # transformer dim_feedforward
BATCH = 2

SLAB_COLS = 128     # lane width of the packed weight slab


def _pack_slab(entries):
    """Pack (name, 2-D array) entries into one (R, 128) f32 slab.

    Each entry starts at an 8-row-aligned offset; returns (slab, offsets) with
    offsets[name] = (row_offset, (rows, cols)) for static in-kernel slicing.
    """
    blocks, offsets, off = [], {}, 0
    for name, arr in entries:
        arr = jnp.asarray(arr, jnp.float32)
        r, c = arr.shape
        rp = -(-r // 8) * 8
        blocks.append(jnp.zeros((rp, SLAB_COLS), jnp.float32).at[:r, :c].set(arr))
        offsets[name] = (off, (r, c))
        off += rp
    return jnp.concatenate(blocks, axis=0), offsets


def _make_kernel(offs):
    F, W = FEATS, WINDOW
    SQF = math.sqrt(F)

    def rd(ref, name):
        off, (r, c) = offs[name]
        return ref[off:off + r, 0:c]                 # static, 8-row-aligned slab view

    def kernel(xcol_ref, slab_ref, out_ref):
        # One grid step == one batch element (time-major rows, W=10).
        xcol = xcol_ref[0]                                          # (W, (KL+KG)*F)

        # ---- Tcn_Local conv + Tcn_Global conv1: ONE block-diagonal im2col matmul ----
        pre = jnp.dot(xcol, rd(slab_ref, 'w_conv'),
                      preferred_element_type=jnp.float32) + rd(slab_ref, 'b_conv')
        pre = jnp.maximum(pre, 0.0)                                 # ReLU of both convs
        l_att = pre[:, 0:F]                                         # Tcn_Local output
        g1 = pre[:, F:2 * F]                                        # Tcn_Global conv1 out

        # ---- Tcn_Global conv2 (k=3, dilation=2, causal): shift-matrix matmuls -------
        # h2[t] = b + sum_j  (S_j @ g1)[t] @ W_j   with S_j[t,t'] = [t' == t-4+2j]
        h2 = rd(slab_ref, 'b_g2')                                   # (1, F) -> broadcast
        for j in range(KG):
            sh = jnp.dot(rd(slab_ref, f's_g2_{j}'), g1,
                         preferred_element_type=jnp.float32)        # causal time shift
            h2 = h2 + jnp.dot(sh, rd(slab_ref, f'w_g2_{j}'),
                              preferred_element_type=jnp.float32)
        h2 = jnp.maximum(h2, 0.0)
        x_tm = xcol[:, (KL - 1) * F:KL * F]                         # raw input, time-major
        g_att = jnp.maximum(h2 + x_tm, 0.0)                         # residual + ReLU

        # ---- both TranAD/DTAAD encoder branches fused on the lane axis --------------
        att = jnp.concatenate([l_att, g_att], axis=-1)              # (W, 2F)
        src = att * SQF + rd(slab_ref, 'pe')                        # PE tiled on lanes

        # fused Q/K/V projection for both branches: block-diag (2F, 6F) weight,
        # column layout [Q1|Q2|K1|K2|V1|V2] so q/k/v slices already hold both branches.
        qkv = jnp.dot(src, rd(slab_ref, 'w_qkv'),
                      preferred_element_type=jnp.float32) + rd(slab_ref, 'b_qkv')
        q = qkv[:, 0:2 * F]
        k = qkv[:, 2 * F:4 * F]
        v = qkv[:, 4 * F:6 * F]

        # nhead = F, head_dim = 1 -> per-lane attention; both branches' heads on 2F lanes
        s = q[:, None, :] * k[None, :, :]                           # (Wq, Wk, 2F)
        m = jnp.max(s, axis=1, keepdims=True)
        p = jnp.exp(s - m)
        den = jnp.sum(p, axis=1)                                    # (W, 2F)
        num = jnp.sum(p * v[None, :, :], axis=1)                    # (W, 2F)
        attn = num / den                                            # exact div (parity fix)

        src = src + jnp.dot(attn, rd(slab_ref, 'w_o'),
                            preferred_element_type=jnp.float32) + rd(slab_ref, 'b_o')
        h = jnp.dot(src, rd(slab_ref, 'w_1'),
                    preferred_element_type=jnp.float32) + rd(slab_ref, 'b_1')
        # nn.LeakyReLU(True) -> negative_slope == 1 -> identity (matches PyTorch).
        z = src + jnp.dot(h, rd(slab_ref, 'w_2'),
                          preferred_element_type=jnp.float32) + rd(slab_ref, 'b_2')

        # ---- shared fcn on both branches (block-diag, same weight twice) ------------
        c = z + jnp.dot(z, rd(slab_ref, 'w_fcn'),
                        preferred_element_type=jnp.float32) + rd(slab_ref, 'b_fcn')

        # ---- decoder1/decoder2 (Linear(W,1)+Sigmoid) as one (2,W)@(W,2F) matmul -----
        # row 0 uses dec1 weights (valid on lanes 0:F), row 1 dec2 (lanes F:2F).
        y = jnp.dot(rd(slab_ref, 'w_dec'), c,
                    preferred_element_type=jnp.float32) + rd(slab_ref, 'b_dec')
        out_ref[0] = jax.nn.sigmoid(y)                              # (2, 2F)

    return kernel


def dtaad_forward(x, slab, offsets):
    """x: (B, FEATS, WINDOW) float32 (PyTorch NCW) -> (x1, x2), each (B, 1, FEATS)."""
    B, F, W = x.shape
    assert (F, W) == (FEATS, WINDOW)
    # glue: NCW -> time-major + im2col of the two first-layer causal convs (layout only)
    x_tm = jnp.transpose(x, (0, 2, 1))                              # (B, W, F)

    def im2col(k):
        pad = jnp.zeros((B, k - 1, F), x.dtype)
        xp = jnp.concatenate([pad, x_tm], axis=1)
        return jnp.concatenate([xp[:, j:j + W, :] for j in range(k)], axis=-1)

    xcol = jnp.concatenate([im2col(KL), im2col(KG)], axis=-1)       # (B, W, (KL+KG)*F)
    ccols = (KL + KG) * F

    out = pl.pallas_call(
        _make_kernel(offsets),
        out_shape=jax.ShapeDtypeStruct((B, 2, 2 * F), jnp.float32),
        grid_spec=pltpu.PrefetchScalarGridSpec(
            num_scalar_prefetch=0,
            grid=(B,),                                              # one window per step
            in_specs=[pl.BlockSpec((1, W, ccols), lambda b: (b, 0, 0)),
                      pl.BlockSpec(slab.shape, lambda b: (0, 0))],  # resident slab
            out_specs=pl.BlockSpec((1, 2, 2 * F), lambda b: (b, 0, 0)),
        ),
        compiler_params=pltpu.CompilerParams(
            dimension_semantics=("parallel",)),                     # v7x: both TCs busy
    )(xcol, slab)

    x1 = out[:, 0, :F][:, None, :]                                  # (B, 1, F)
    x2 = out[:, 1, F:][:, None, :]                                  # (B, 1, F)
    return x1, x2


def init_params(key):
    """Deterministic synthetic parameters (PyTorch layout) + packed kernel slab."""
    F, W = FEATS, WINDOW
    keys = iter(jax.random.split(key, 48))

    def nrm(shape, scale):
        return jax.random.normal(next(keys), shape, jnp.float32) * scale

    def wn_conv(k):     # weight_norm'd Conv1d(F, F, k) effective weight (host glue)
        v = nrm((F, F, k), 0.1)
        g = 1.0 + 0.1 * nrm((F, 1, 1), 1.0)
        return g * v / jnp.sqrt(jnp.sum(v * v, axis=(1, 2), keepdims=True))

    l_conv_w, l_conv_b = wn_conv(KL), nrm((F,), 0.1)
    g1_conv_w, g1_conv_b = wn_conv(KG), nrm((F,), 0.1)
    g2_conv_w, g2_conv_b = wn_conv(KG), nrm((F,), 0.1)

    def enc():
        return dict(in_w=nrm((3 * F, F), 0.3), in_b=nrm((3 * F,), 0.1),
                    out_w=nrm((F, F), 0.3), out_b=nrm((F,), 0.1),
                    w1=nrm((DFF, F), 0.3), b1=nrm((DFF,), 0.1),
                    w2=nrm((F, DFF), 0.3), b2=nrm((F,), 0.1))

    enc1, enc2 = enc(), enc()
    fcn_w, fcn_b = nrm((F, F), 0.3), nrm((F,), 0.1)
    dec1_w, dec1_b = nrm((1, W), 0.3), nrm((1,), 0.1)
    dec2_w, dec2_b = nrm((1, W), 0.3), nrm((1,), 0.1)

    # TranAD-style PositionalEncoding buffer: pe[t, d] = sin(t*div[d]) + cos(t*div[d])
    pos = jnp.arange(W, dtype=jnp.float32)[:, None]
    div = jnp.exp(jnp.arange(F, dtype=jnp.float32) * (-math.log(10000.0) / F))
    pe = jnp.sin(pos * div) + jnp.cos(pos * div)

    ref_params = dict(l_conv_w=l_conv_w, l_conv_b=l_conv_b,
                      g1_conv_w=g1_conv_w, g1_conv_b=g1_conv_b,
                      g2_conv_w=g2_conv_w, g2_conv_b=g2_conv_b,
                      enc1=enc1, enc2=enc2, fcn_w=fcn_w, fcn_b=fcn_b,
                      dec1_w=dec1_w, dec1_b=dec1_b, dec2_w=dec2_w, dec2_b=dec2_b,
                      pe=pe)

    # ---- pack every weight / bias / buffer / shift matrix into one VMEM slab ---------
    def col(w):        # conv weight (out, in, k) -> im2col weight (k*in, out)
        return jnp.transpose(w, (2, 1, 0)).reshape(-1, w.shape[0])

    def blkdiag(a, b):
        r1, c1 = a.shape
        r2, c2 = b.shape
        m = jnp.zeros((r1 + r2, c1 + c2), jnp.float32)
        return m.at[:r1, :c1].set(a).at[r1:, c1:].set(b)

    # fused first-layer convs (local k=4 | global k=3), block-diag on the lane axis
    w_conv = jnp.zeros(((KL + KG) * F, 2 * F), jnp.float32)
    w_conv = w_conv.at[:KL * F, :F].set(col(l_conv_w))
    w_conv = w_conv.at[KL * F:, F:].set(col(g1_conv_w))
    b_conv = jnp.concatenate([l_conv_b, g1_conv_b])[None, :]

    # causal shift matrices for the dilation-2 conv2: S_j[t, t'] = [t' == t - 4 + 2j]
    def shift_mat(j):
        m = np.zeros((W, W), np.float32)
        for t in range(W):
            tp = t - 2 * (KG - 1) + 2 * j
            if 0 <= tp < W:
                m[t, tp] = 1.0
        return m

    # fused encoder weights (both branches block-diag on lanes)
    wq1, wk1, wv1 = enc1['in_w'][:F].T, enc1['in_w'][F:2 * F].T, enc1['in_w'][2 * F:].T
    wq2, wk2, wv2 = enc2['in_w'][:F].T, enc2['in_w'][F:2 * F].T, enc2['in_w'][2 * F:].T
    bq1, bk1, bv1 = enc1['in_b'][:F], enc1['in_b'][F:2 * F], enc1['in_b'][2 * F:]
    bq2, bk2, bv2 = enc2['in_b'][:F], enc2['in_b'][F:2 * F], enc2['in_b'][2 * F:]
    w_qkv = jnp.concatenate([blkdiag(wq1, wq2), blkdiag(wk1, wk2),
                             blkdiag(wv1, wv2)], axis=1)            # (2F, 6F)
    b_qkv = jnp.concatenate([bq1, bq2, bk1, bk2, bv1, bv2])[None, :]

    entries = [('pe', jnp.concatenate([pe, pe], axis=1)),           # (W, 2F)
               ('w_conv', w_conv), ('b_conv', b_conv),
               ('b_g2', g2_conv_b[None, :])]
    for j in range(KG):
        entries += [(f's_g2_{j}', shift_mat(j)),
                    (f'w_g2_{j}', g2_conv_w[:, :, j].T)]
    entries += [('w_qkv', w_qkv), ('b_qkv', b_qkv),
                ('w_o', blkdiag(enc1['out_w'].T, enc2['out_w'].T)),
                ('b_o', jnp.concatenate([enc1['out_b'], enc2['out_b']])[None, :]),
                ('w_1', blkdiag(enc1['w1'].T, enc2['w1'].T)),
                ('b_1', jnp.concatenate([enc1['b1'], enc2['b1']])[None, :]),
                ('w_2', blkdiag(enc1['w2'].T, enc2['w2'].T)),
                ('b_2', jnp.concatenate([enc1['b2'], enc2['b2']])[None, :]),
                ('w_fcn', blkdiag(fcn_w.T, fcn_w.T)),
                ('b_fcn', jnp.concatenate([fcn_b, fcn_b])[None, :]),
                ('w_dec', jnp.stack([dec1_w[0], dec2_w[0]], axis=0)),   # (2, W)
                ('b_dec', jnp.stack([dec1_b, dec2_b], axis=0))]         # (2, 1)
    slab, offsets = _pack_slab(entries)
    return ref_params, slab, offsets


def reference_forward(x, p):
    """Pure-JAX mirror of the PyTorch forward (eval mode), original NCW layout."""
    F, W = FEATS, WINDOW

    def causal_conv(xin, w, b, k, dil):
        xpad = jnp.pad(xin, ((0, 0), (0, 0), (dil * (k - 1), 0)))
        out = b[None, :, None]
        for j in range(k):
            out = out + jnp.einsum('oi,biw->bow', w[:, :, j],
                                   xpad[:, :, dil * j:dil * j + W])
        return out

    l_atts = jax.nn.relu(causal_conv(x, p['l_conv_w'], p['l_conv_b'], KL, 1))
    h1 = jax.nn.relu(causal_conv(x, p['g1_conv_w'], p['g1_conv_b'], KG, 1))
    h2 = jax.nn.relu(causal_conv(h1, p['g2_conv_w'], p['g2_conv_b'], KG, 2))
    g_atts = jax.nn.relu(h2 + x)    # residual; downsample is None (n_window == feats)

    def encoder(att, q):
        src = jnp.transpose(att, (2, 0, 1)) * math.sqrt(F) + p['pe'][:, None, :]
        wq, wk, wv = q['in_w'][:F], q['in_w'][F:2 * F], q['in_w'][2 * F:]
        bq, bk, bv = q['in_b'][:F], q['in_b'][F:2 * F], q['in_b'][2 * F:]
        Q, K, V = src @ wq.T + bq, src @ wk.T + bk, src @ wv.T + bv
        scores = jnp.einsum('qbf,kbf->bfqk', Q, K)      # head_dim = 1 -> scale 1
        pr = jax.nn.softmax(scores, axis=-1)
        attn = jnp.einsum('bfqk,kbf->qbf', pr, V)
        src = src + attn @ q['out_w'].T + q['out_b']
        h = src @ q['w1'].T + q['b1']                   # LeakyReLU(True) == identity
        return src + h @ q['w2'].T + q['b2']

    z1 = encoder(l_atts, p['enc1'])
    z2 = encoder(g_atts, p['enc2'])

    def head(z, wd, bd):
        c = z + z @ p['fcn_w'].T + p['fcn_b']
        cp = jnp.transpose(c, (1, 2, 0))                # (B, F, W)
        return jax.nn.sigmoid(jnp.einsum('bfw,w->bf', cp, wd[0]) + bd[0])[:, None, :]

    return head(z1, p['dec1_w'], p['dec1_b']), head(z2, p['dec2_w'], p['dec2_b'])


if __name__ == "__main__":
    key = jax.random.PRNGKey(0)
    kx, kp = jax.random.split(key)
    x = jax.random.normal(kx, (BATCH, FEATS, WINDOW), jnp.float32)   # PyTorch NCW input
    ref_params, slab, offsets = init_params(kp)

    fwd = jax.jit(lambda xx, ss: dtaad_forward(xx, ss, offsets))
    x1, x2 = jax.block_until_ready(fwd(x, slab))
    assert x1.shape == (BATCH, 1, FEATS) and x2.shape == (BATCH, 1, FEATS)

    r1, r2 = reference_forward(x, ref_params)
    np.testing.assert_allclose(np.asarray(x1), np.asarray(r1), rtol=2e-3, atol=2e-3)
    np.testing.assert_allclose(np.asarray(x2), np.asarray(r2), rtol=2e-3, atol=2e-3)
    print("KERNEL_OK")
</pallas_src>

<mosaic_0001>
module attributes {stable_mosaic.version = 11 : i64} {
  func.func @kernel(%arg0: i32, %arg1: memref<1x10x70xf32, #tpu.memory_space<vmem>>, %arg2: memref<384x128xf32, #tpu.memory_space<vmem>>, %arg3: memref<1x2x20xf32, #tpu.memory_space<vmem>>) attributes {dimension_semantics = [#tpu.dimension_semantics<parallel>], iteration_bounds = array<i64: 2>, scalar_prefetch = 0 : i64, scratch_operands = 0 : i64, tpu.core_type = #tpu.core_type<tc>, window_params = [{transform_indices = @transform_0, window_bounds = array<i64: 1, 10, 70>}, {pipeline_mode = #tpu.pipeline_mode<synchronous>, transform_indices = @transform_1, window_bounds = array<i64: 384, 128>}, {transform_indices = @transform_2, window_bounds = array<i64: 1, 2, 20>}]} {
    %c0 = arith.constant 0 : index
    %c0_0 = arith.constant 0 : index
    %c0_1 = arith.constant 0 : index
    %0 = vector.load %arg1[%c0, %c0_0, %c0_1] : memref<1x10x70xf32, #tpu.memory_space<vmem>>, vector<1x10x70xf32>
    %1 = vector.shape_cast %0 : vector<1x10x70xf32> to vector<10x70xf32>
    %c16 = arith.constant 16 : index
    %c0_2 = arith.constant 0 : index
    %2 = vector.load %arg2[%c16, %c0_2] : memref<384x128xf32, #tpu.memory_space<vmem>>, vector<70x20xf32>
    %cst = arith.constant dense<0.000000e+00> : vector<10x20xf32>
    %3 = tpu.matmul %1, %2, %cst {dimension_numbers = #tpu.dot_dimension_numbers<[1], [0], [0], [1], [0, 0, 1, 1], [], []>} : vector<10x70xf32>, vector<70x20xf32>, vector<10x20xf32> -> vector<10x20xf32>
    %c88 = arith.constant 88 : index
    %c0_3 = arith.constant 0 : index
    %4 = vector.load %arg2[%c88, %c0_3] : memref<384x128xf32, #tpu.memory_space<vmem>>, vector<1x20xf32>
    %5 = vector.broadcast %4 : vector<1x20xf32> to vector<10x20xf32>
    %6 = arith.addf %3, %5 : vector<10x20xf32>
    %cst_4 = arith.constant 0.000000e+00 : f32
    %7 = vector.broadcast %cst_4 : f32 to vector<10x20xf32>
    %8 = arith.maximumf %6, %7 : vector<10x20xf32>
    %9 = vector.extract_strided_slice %8 {offsets = [0, 0], sizes = [10, 10], strides = [1, 1]} : vector<10x20xf32> to vector<10x10xf32>
    %10 = vector.extract_strided_slice %8 {offsets = [0, 10], sizes = [10, 10], strides = [1, 1]} : vector<10x20xf32> to vector<10x10xf32>
    %c96 = arith.constant 96 : index
    %c0_5 = arith.constant 0 : index
    %11 = vector.load %arg2[%c96, %c0_5] : memref<384x128xf32, #tpu.memory_space<vmem>>, vector<1x10xf32>
    %c104 = arith.constant 104 : index
    %c0_6 = arith.constant 0 : index
    %12 = vector.load %arg2[%c104, %c0_6] : memref<384x128xf32, #tpu.memory_space<vmem>>, vector<10x10xf32>
    %cst_7 = arith.constant dense<0.000000e+00> : vector<10x10xf32>
    %13 = tpu.matmul %12, %10, %cst_7 {dimension_numbers = #tpu.dot_dimension_numbers<[1], [0], [0], [1], [0, 0, 1, 1], [], []>} : vector<10x10xf32>, vector<10x10xf32>, vector<10x10xf32> -> vector<10x10xf32>
    %c120 = arith.constant 120 : index
    %c0_8 = arith.constant 0 : index
    %14 = vector.load %arg2[%c120, %c0_8] : memref<384x128xf32, #tpu.memory_space<vmem>>, vector<10x10xf32>
    %cst_9 = arith.constant dense<0.000000e+00> : vector<10x10xf32>
    %15 = tpu.matmul %13, %14, %cst_9 {dimension_numbers = #tpu.dot_dimension_numbers<[1], [0], [0], [1], [0, 0, 1, 1], [], []>} : vector<10x10xf32>, vector<10x10xf32>, vector<10x10xf32> -> vector<10x10xf32>
    %16 = vector.broadcast %11 : vector<1x10xf32> to vector<10x10xf32>
    %17 = arith.addf %16, %15 : vector<10x10xf32>
    %c136 = arith.constant 136 : index
    %c0_10 = arith.constant 0 : index
    %18 = vector.load %arg2[%c136, %c0_10] : memref<384x128xf32, #tpu.memory_space<vmem>>, vector<10x10xf32>
    %cst_11 = arith.constant dense<0.000000e+00> : vector<10x10xf32>
    %19 = tpu.matmul %18, %10, %cst_11 {dimension_numbers = #tpu.dot_dimension_numbers<[1], [0], [0], [1], [0, 0, 1, 1], [], []>} : vector<10x10xf32>, vector<10x10xf32>, vector<10x10xf32> -> vector<10x10xf32>
    %c152 = arith.constant 152 : index
    %c0_12 = arith.constant 0 : index
    %20 = vector.load %arg2[%c152, %c0_12] : memref<384x128xf32, #tpu.memory_space<vmem>>, vector<10x10xf32>
    %cst_13 = arith.constant dense<0.000000e+00> : vector<10x10xf32>
    %21 = tpu.matmul %19, %20, %cst_13 {dimension_numbers = #tpu.dot_dimension_numbers<[1], [0], [0], [1], [0, 0, 1, 1], [], []>} : vector<10x10xf32>, vector<10x10xf32>, vector<10x10xf32> -> vector<10x10xf32>
    %22 = arith.addf %17, %21 : vector<10x10xf32>
    %c168 = arith.constant 168 : index
    %c0_14 = arith.constant 0 : index
    %23 = vector.load %arg2[%c168, %c0_14] : memref<384x128xf32, #tpu.memory_space<vmem>>, vector<10x10xf32>
    %cst_15 = arith.constant dense<0.000000e+00> : vector<10x10xf32>
    %24 = tpu.matmul %23, %10, %cst_15 {dimension_numbers = #tpu.dot_dimension_numbers<[1], [0], [0], [1], [0, 0, 1, 1], [], []>} : vector<10x10xf32>, vector<10x10xf32>, vector<10x10xf32> -> vector<10x10xf32>
    %c184 = arith.constant 184 : index
    %c0_16 = arith.constant 0 : index
    %25 = vector.load %arg2[%c184, %c0_16] : memref<384x128xf32, #tpu.memory_space<vmem>>, vector<10x10xf32>
    %cst_17 = arith.constant dense<0.000000e+00> : vector<10x10xf32>
    %26 = tpu.matmul %24, %25, %cst_17 {dimension_numbers = #tpu.dot_dimension_numbers<[1], [0], [0], [1], [0, 0, 1, 1], [], []>} : vector<10x10xf32>, vector<10x10xf32>, vector<10x10xf32> -> vector<10x10xf32>
    %27 = arith.addf %22, %26 : vector<10x10xf32>
    %cst_18 = arith.constant 0.000000e+00 : f32
    %28 = vector.broadcast %cst_18 : f32 to vector<10x10xf32>
    %29 = arith.maximumf %27, %28 : vector<10x10xf32>
    %30 = vector.extract_strided_slice %1 {offsets = [0, 30], sizes = [10, 10], strides = [1, 1]} : vector<10x70xf32> to vector<10x10xf32>
    %31 = arith.addf %29, %30 : vector<10x10xf32>
    %cst_19 = arith.constant 0.000000e+00 : f32
    %32 = vector.broadcast %cst_19 : f32 to vector<10x10xf32>
    %33 = arith.maximumf %31, %32 : vector<10x10xf32>
    %34 = tpu.concatenate %9, %33 in 1 : vector<10x10xf32>, vector<10x10xf32> -> vector<10x20xf32>
    %cst_20 = arith.constant 3.1622777 : f32
    %35 = vector.broadcast %cst_20 : f32 to vector<10x20xf32>
    %36 = arith.mulf %34, %35 : vector<10x20xf32>
    %c0_21 = arith.constant 0 : index
    %c0_22 = arith.constant 0 : index
    %37 = vector.load %arg2[%c0_21, %c0_22] : memref<384x128xf32, #tpu.memory_space<vmem>>, vector<10x20xf32>
    %38 = arith.addf %36, %37 : vector<10x20xf32>
    %c200 = arith.constant 200 : index
    %c0_23 = arith.constant 0 : index
    %39 = vector.load %arg2[%c200, %c0_23] : memref<384x128xf32, #tpu.memory_space<vmem>>, vector<20x60xf32>
    %cst_24 = arith.constant dense<0.000000e+00> : vector<10x60xf32>
    %40 = tpu.matmul %38, %39, %cst_24 {dimension_numbers = #tpu.dot_dimension_numbers<[1], [0], [0], [1], [0, 0, 1, 1], [], []>} : vector<10x20xf32>, vector<20x60xf32>, vector<10x60xf32> -> vector<10x60xf32>
    %c224 = arith.constant 224 : index
    %c0_25 = arith.constant 0 : index
    %41 = vector.load %arg2[%c224, %c0_25] : memref<384x128xf32, #tpu.memory_space<vmem>>, vector<1x60xf32>
    %42 = vector.broadcast %41 : vector<1x60xf32> to vector<10x60xf32>
    %43 = arith.addf %40, %42 : vector<10x60xf32>
    %44 = vector.extract_strided_slice %43 {offsets = [0, 0], sizes = [10, 20], strides = [1, 1]} : vector<10x60xf32> to vector<10x20xf32>
    %45 = vector.extract_strided_slice %43 {offsets = [0, 20], sizes = [10, 20], strides = [1, 1]} : vector<10x60xf32> to vector<10x20xf32>
    %46 = vector.extract_strided_slice %43 {offsets = [0, 40], sizes = [10, 20], strides = [1, 1]} : vector<10x60xf32> to vector<10x20xf32>
    %47 = vector.shape_cast %44 : vector<10x20xf32> to vector<10x1x20xf32>
    %48 = vector.shape_cast %45 : vector<10x20xf32> to vector<1x10x20xf32>
    %49 = vector.broadcast %47 : vector<10x1x20xf32> to vector<10x10x20xf32>
    %50 = vector.broadcast %48 : vector<1x10x20xf32> to vector<10x10x20xf32>
    %51 = arith.mulf %49, %50 : vector<10x10x20xf32>
    %cst_26 = arith.constant dense<0xFF800000> : vector<10x20xf32>
    %52 = vector.multi_reduction <maximumf>, %51, %cst_26 [1] : vector<10x10x20xf32> to vector<10x20xf32>
    %53 = vector.shape_cast %52 : vector<10x20xf32> to vector<10x1x20xf32>
    %54 = vector.broadcast %53 : vector<10x1x20xf32> to vector<10x10x20xf32>
    %55 = arith.subf %51, %54 : vector<10x10x20xf32>
    %56 = math.exp %55 : vector<10x10x20xf32>
    %cst_27 = arith.constant dense<0.000000e+00> : vector<10x20xf32>
    %57 = vector.multi_reduction <add>, %56, %cst_27 [1] : vector<10x10x20xf32> to vector<10x20xf32>
    %58 = vector.shape_cast %46 : vector<10x20xf32> to vector<1x10x20xf32>
    %59 = vector.broadcast %58 : vector<1x10x20xf32> to vector<10x10x20xf32>
    %60 = arith.mulf %56, %59 : vector<10x10x20xf32>
    %cst_28 = arith.constant dense<0.000000e+00> : vector<10x20xf32>
    %61 = vector.multi_reduction <add>, %60, %cst_28 [1] : vector<10x10x20xf32> to vector<10x20xf32>
    %62 = arith.divf %61, %57 : vector<10x20xf32>
    %c232 = arith.constant 232 : index
    %c0_29 = arith.constant 0 : index
    %63 = vector.load %arg2[%c232, %c0_29] : memref<384x128xf32, #tpu.memory_space<vmem>>, vector<20x20xf32>
    %cst_30 = arith.constant dense<0.000000e+00> : vector<10x20xf32>
    %64 = tpu.matmul %62, %63, %cst_30 {dimension_numbers = #tpu.dot_dimension_numbers<[1], [0], [0], [1], [0, 0, 1, 1], [], []>} : vector<10x20xf32>, vector<20x20xf32>, vector<10x20xf32> -> vector<10x20xf32>
    %65 = arith.addf %38, %64 : vector<10x20xf32>
    %c256 = arith.constant 256 : index
    %c0_31 = arith.constant 0 : index
    %66 = vector.load %arg2[%c256, %c0_31] : memref<384x128xf32, #tpu.memory_space<vmem>>, vector<1x20xf32>
    %67 = vector.broadcast %66 : vector<1x20xf32> to vector<10x20xf32>
    %68 = arith.addf %65, %67 : vector<10x20xf32>
    %c264 = arith.constant 264 : index
    %c0_32 = arith.constant 0 : index
    %69 = vector.load %arg2[%c264, %c0_32] : memref<384x128xf32, #tpu.memory_space<vmem>>, vector<20x32xf32>
    %cst_33 = arith.constant dense<0.000000e+00> : vector<10x32xf32>
    %70 = tpu.matmul %68, %69, %cst_33 {dimension_numbers = #tpu.dot_dimension_numbers<[1], [0], [0], [1], [0, 0, 1, 1], [], []>} : vector<10x20xf32>, vector<20x32xf32>, vector<10x32xf32> -> vector<10x32xf32>
    %c288 = arith.constant 288 : index
    %c0_34 = arith.constant 0 : index
    %71 = vector.load %arg2[%c288, %c0_34] : memref<384x128xf32, #tpu.memory_space<vmem>>, vector<1x32xf32>
    %72 = vector.broadcast %71 : vector<1x32xf32> to vector<10x32xf32>
    %73 = arith.addf %70, %72 : vector<10x32xf32>
    %c296 = arith.constant 296 : index
    %c0_35 = arith.constant 0 : index
    %74 = vector.load %arg2[%c296, %c0_35] : memref<384x128xf32, #tpu.memory_space<vmem>>, vector<32x20xf32>
    %cst_36 = arith.constant dense<0.000000e+00> : vector<10x20xf32>
    %75 = tpu.matmul %73, %74, %cst_36 {dimension_numbers = #tpu.dot_dimension_numbers<[1], [0], [0], [1], [0, 0, 1, 1], [], []>} : vector<10x32xf32>, vector<32x20xf32>, vector<10x20xf32> -> vector<10x20xf32>
    %76 = arith.addf %68, %75 : vector<10x20xf32>
    %c328 = arith.constant 328 : index
    %c0_37 = arith.constant 0 : index
    %77 = vector.load %arg2[%c328, %c0_37] : memref<384x128xf32, #tpu.memory_space<vmem>>, vector<1x20xf32>
    %78 = vector.broadcast %77 : vector<1x20xf32> to vector<10x20xf32>
    %79 = arith.addf %76, %78 : vector<10x20xf32>
    %c336 = arith.constant 336 : index
    %c0_38 = arith.constant 0 : index
    %80 = vector.load %arg2[%c336, %c0_38] : memref<384x128xf32, #tpu.memory_space<vmem>>, vector<20x20xf32>
    %cst_39 = arith.constant dense<0.000000e+00> : vector<10x20xf32>
    %81 = tpu.matmul %79, %80, %cst_39 {dimension_numbers = #tpu.dot_dimension_numbers<[1], [0], [0], [1], [0, 0, 1, 1], [], []>} : vector<10x20xf32>, vector<20x20xf32>, vector<10x20xf32> -> vector<10x20xf32>
    %82 = arith.addf %79, %81 : vector<10x20xf32>
    %c360 = arith.constant 360 : index
    %c0_40 = arith.constant 0 : index
    %83 = vector.load %arg2[%c360, %c0_40] : memref<384x128xf32, #tpu.memory_space<vmem>>, vector<1x20xf32>
    %84 = vector.broadcast %83 : vector<1x20xf32> to vector<10x20xf32>
    %85 = arith.addf %82, %84 : vector<10x20xf32>
    %c368 = arith.constant 368 : index
    %c0_41 = arith.constant 0 : index
    %86 = vector.load %arg2[%c368, %c0_41] : memref<384x128xf32, #tpu.memory_space<vmem>>, vector<2x10xf32>
    %cst_42 = arith.constant dense<0.000000e+00> : vector<2x20xf32>
    %87 = tpu.matmul %86, %85, %cst_42 {dimension_numbers = #tpu.dot_dimension_numbers<[1], [0], [0], [1], [0, 0, 1, 1], [], []>} : vector<2x10xf32>, vector<10x20xf32>, vector<2x20xf32> -> vector<2x20xf32>
    %c376 = arith.constant 376 : index
    %c0_43 = arith.constant 0 : index
    %88 = vector.load %arg2[%c376, %c0_43] : memref<384x128xf32, #tpu.memory_space<vmem>>, vector<2x1xf32>
    %89 = vector.broadcast %88 : vector<2x1xf32> to vector<2x20xf32>
    %90 = arith.addf %87, %89 : vector<2x20xf32>
    %91 = arith.negf %90 : vector<2x20xf32>
    %92 = math.exp %91 : vector<2x20xf32>
    %cst_44 = arith.constant 1.000000e+00 : f32
    %93 = vector.broadcast %cst_44 : f32 to vector<2x20xf32>
    %94 = arith.addf %93, %92 : vector<2x20xf32>
    %95 = arith.divf %93, %94 : vector<2x20xf32>
    %c0_45 = arith.constant 0 : index
    %c0_46 = arith.constant 0 : index
    %c0_47 = arith.constant 0 : index
    %96 = vector.load %arg3[%c0_45, %c0_46, %c0_47] : memref<1x2x20xf32, #tpu.memory_space<vmem>>, vector<1x2x20xf32>
    %97 = vector.shape_cast %96 : vector<1x2x20xf32> to vector<2x20xf32>
    %98 = vector.shape_cast %95 : vector<2x20xf32> to vector<1x2x20xf32>
    tpu.vector_store %arg3[%c0_45, %c0_46, %c0_47], %98 {strides = array<i32>} : memref<1x2x20xf32, #tpu.memory_space<vmem>>, vector<1x2x20xf32>,
    return
  }
  func.func @transform_0(%arg0: i32) -> (i32, i32, i32) {
    %c0_i32 = arith.constant 0 : i32
    %c0_i32_0 = arith.constant 0 : i32
    %c0_i32_1 = arith.constant 0 : i32
    return %arg0, %c0_i32, %c0_i32_0 : i32, i32, i32
  }
  func.func @transform_1(%arg0: i32) -> (i32, i32) {
    %c0_i32 = arith.constant 0 : i32
    %c0_i32_0 = arith.constant 0 : i32
    %c0_i32_1 = arith.constant 0 : i32
    return %c0_i32, %c0_i32_0 : i32, i32
  }
  func.func @transform_2(%arg0: i32) -> (i32, i32, i32) {
    %c0_i32 = arith.constant 0 : i32
    %c0_i32_0 = arith.constant 0 : i32
    %c0_i32_1 = arith.constant 0 : i32
    return %arg0, %c0_i32, %c0_i32_0 : i32, i32, i32
  }
}

</mosaic_0001>

<bundles_post_ra>
// kernel: _lambda_.1
= control target key start
LH: loop header
LB: loop body
LE: loop exit
PB: predicated region body
PF: predicated region fallthrough
CT: control target
= control target key end

     0   :  { %s1491_s9 = smov 0   ;;  %s2083_s0 = inlined_call_operand.vmem [shape: f32[2,10,70], index: 0, kind: input, shape index: {}]   ;;  %s2084_s1 = inlined_call_operand.vmem [shape: f32[384,128], index: 1, kind: input, shape index: {}]   ;;  %s2085_s2 = inlined_call_operand.vmem [shape: f32[2,2,20], index: 2, kind: output, shape index: {}]  }
   0x1 LB: > { %s1323_s10 = sadd.s32 4294967295, %s1468_s9   ;;  %p1327_p0 = scmp.ge.s32.totalorder %s1468_s9, 1  ;;  %s1468_s9 = sphi %s1491_s9, %s12_s9  }
   0x2   : > { %p112_p1 = scmp.lt.s32.totalorder %s1468_s9, 3 }
   0x4   : > { %p113_p2 = pnand %p1327_p0, %p112_p1 }
   0x5   : > { %p133_p3 = scmp.lt.s32.totalorder (!%p113_p2), %s1323_s10, 1  ;;  %s1470_s13 = smov (!%p113_p2), 118  }
   0x6   : > { %116 = sbr.rel (%p113_p2) target bundleno = 1913 (0x779), region = 28  ;;  %s1472_s11 = smov (!%p113_p2), 10  }
   0x7   : > { %s1473_s24 = smov (!%p113_p2), 108   ;;  %s1474_s25 = smov (!%p113_p2), 88  }
   0xb   : > { %v152_v0 = vld [vmem:[%s2084_s1 + $0x50] sm:$0x3f]  ;;  %vm162_vm0 = vcmask 1045504   ;;  %v151_v1 = vld [vmem:[%s2084_s1 + $0x48] sm:$0xff]  ;;  %v150_v2 = vld [vmem:[%s2084_s1 + $0x40] sm:$0xff]  ;;  %s2107_s10 = smov (!%p133_p3, %s1323_s10), 1 }
   0xc   : > { %1331 = vmatpush.msk.msra.mxu0 %vm162_vm0, %v152_v0  ;;  %v149_v3 = vld [vmem:[%s2084_s1 + $0x38] sm:$0xff]  ;;  %v148_v4 = vld [vmem:[%s2084_s1 + $0x30] sm:$0xff]  ;;  %v147_v5 = vld [vmem:[%s2084_s1 + $0x28] sm:$0xff]  ;;  %s1371_s23 = sshll.u32 %s2107_s10, 4  ;;  %vm155_vm1 = vcmask 572416   ;;  %vm2087_vm2 = vcmask 1041408  }
   0xd   : > { %v146_v6 = vld [vmem:[%s2084_s1 + $0x20] sm:$0xff]  ;;  %v145_v7 = vld [vmem:[%s2084_s1 + $0x18] sm:$0xff]  ;;  %s137_s30 = scalar_lea.vmem %s2083_s0, %s1371_s23  ;;  %v144_v8 = vld [vmem:[%s2084_s1 + $0x10] sm:$0xff]  ;;  %vm2086_vm3 = vcmask 80896   ;;  %vm445_vm4 = vcmask 1043456   ;;  %vm438_vm5 = vcmask 162816  }
   0xe   : > { %174 = vmatpush.msra.mxu0 %v151_v1  ;;  %v142_v9 = vld [vmem:[%s137_s30] sm:$0xff]  ;;  %v143_v10 = vld [vmem:[%s137_s30 + $0x8] sm:$0x3]  ;;  %v234_v12 = vld [vmem:[%s2084_s1 + $0x78] sm:$0xff]  ;;  %s1471_s30 = smov 98   ;;  %vm529_vm6 = vcmask 156672  }
   0xf   : > { %v235_v11 = vld [vmem:[%s2084_s1 + $0x80] sm:$0x3]  ;;  %v1391_v14 = vld [vmem:[%s2084_s1 + $0x58] ss:$0 sm:$0xff]  ;;  %v192_v21 = vld [vmem:[%s2084_s1 + $0x68] sm:$0xff]  ;;  %409 = vrot.lane.b32.xlu1 %v143_v10, %s1471_s30  ;;  %s1330_s12 = sshll.u32 %s2107_s10, 1 }
  0x10   : > { %175 = vmatpush.msra.mxu0 %v150_v2  ;;  %1337 = vmatpush.msk.msra.mxu2 %vm2087_vm2, %v235_v11  ;;  %v271_v23 = vld [vmem:[%s2084_s1 + $0x88] sm:$0xff]  ;;  %v193_v24 = vld [vmem:[%s2084_s1 + $0x70] sm:$0x3]  ;;  %v303_v26 = vld [vmem:[%s2084_s1 + $0xa0] sm:$0x3]  ;;  %s141_s15 = scalar_lea.vmem %s2085_s2, %s1330_s12 }
  0x11   : > { %v272_v25 = vld [vmem:[%s2084_s1 + $0x90] sm:$0x3]  ;;  %v302_v27 = vld [vmem:[%s2084_s1 + $0x98] sm:$0xff]  ;;  %v338_v31 = vld [vmem:[%s2084_s1 + $0xa8] sm:$0xff] }
  0x12   : > { %176 = vmatpush.msra.mxu0 %v149_v3  ;;  %260 = vmatpush.msra.mxu2 %v234_v12  ;;  %v339_v33 = vld [vmem:[%s2084_s1 + $0xb0] sm:$0x3]  ;;  %v370_v34 = vld [vmem:[%s2084_s1 + $0xc0] sm:$0x3]  ;;  %v369_v35 = vld [vmem:[%s2084_s1 + $0xb8] sm:$0xff] }
  0x13   : > { %v1392_v42 = vld [vmem:[%s2084_s1 + $0x60] ss:$0 sm:$0xff]  ;;  %v435_v59 = vld [vmem:[%s2084_s1 + $0xd8] sm:$0xf]  ;;  %v434_v60 = vld [vmem:[%s2084_s1 + $0xd0] sm:$0xff] }
  0x14   : > { %177 = vmatpush.msra.mxu0 %v148_v4  ;;  %v433_v61 = vld [vmem:[%s2084_s1 + $0xc8] sm:$0xff]  ;;  %v429_v4 = vld [vmem:[%s2084_s1] sm:$0xff] }
  0x15   : > { %v430_v63 = vld [vmem:[%s2084_s1 + $0x8] sm:$0x3] }
  0x16   : > { %178 = vmatpush.msra.mxu0 %v147_v5 }
  0x17   : > { %407 = vrot.lane.b32.xlu1 %v142_v9, %s1471_s30 }
  0x18   : > { %179 = vmatpush.msra.mxu0 %v146_v6 }
  0x1a   : > { %180 = vmatpush.msra.mxu0 %v145_v7 }
  0x1c   : > { %181 = vmatpush.msra.mxu0 %v144_v8  ;;  %v1393_v8 = vld [vmem:[%s2084_s1 + $0xe0] ss:$0 sm:$0xff] }
  0x1d   : > { %1332 = vmatmul.msk.f32.vlgmr.msra.gmra.mxu0 %vm155_vm1, %v142_v9 }
  0x1e   : > { %1352 = vmatpush.msk.msrb.mxu0 %vm445_vm4, %v435_v59 }
  0x20   : > { %463 = vmatpush.msrb.mxu0 %v434_v60 }
  0x22   : > { %464 = vmatpush.msrb.mxu0 %v433_v61 }
  0x25   : > { %1333 = vmatmul.msk.f32.gmra.mxu0 %vm155_vm1, %v143_v10 }
  0x81   : > { %v410_v46 = vpop.permute.xlu1 %409 }
  0x89   : > { %v408_v56 = vpop.permute.xlu1 %407 }
  0x9a   : > { %v183_v13 = vpop.f32.mrf.mxu0 }
  0x9b   : > { %v1547_v18 = vadd.f32 %v1391_v14, %v183_v13 }
  0x9d   : > { %v189_v19 = vmax.f32 %v1547_v18, 0.0 }
  0xa2   : > { %v186_v15 = vpop.f32.mrf.mxu0 }
  0xa3   : > { %v1542_v16 = vadd.f32 %v1391_v14, %v186_v15 }
  0xa5   : > { %v190_v17 = vmax.f32 %v1542_v16, 0.0 }
  0xa7   : > { %198 = vrot.lane.b32.xlu0 %v190_v17, %s1470_s13 }
  0xaf   : > { %196 = vrot.lane.b32.xlu0 %v189_v19, %s1470_s13 }
 0x119   : > { %v199_v20 = vpop.permute.xlu0 %198 }
 0x11a   : > { %1334 = vmatpush.msk.msra.mxu1 %vm2087_vm2, %v199_v20  ;;  %1340 = vmatpush.msk.msra.mxu3 %vm2087_vm2, %v199_v20 }
 0x11b   : > { %1346 = vmatpush.msk.msrb.mxu2 %vm2087_vm2, %v199_v20 }
 0x121   : > { %v197_v22 = vpop.permute.xlu0 %196 }
 0x122   : > { %226 = vmatpush.msra.mxu1 %v197_v22  ;;  %294 = vmatpush.msra.mxu3 %v197_v22 }
 0x123   : > { %361 = vmatpush.msrb.mxu2 %v197_v22  ;;  %1335 = vmatmul.msk.f32.vlgmr.msra.gmra.mxu1 %vm2086_vm3, %v192_v21 }
 0x124   : > { %1341 = vmatmul.msk.f32.vlgmr.msra.gmra.mxu3 %vm2086_vm3, %v271_v23  ;;  %1343 = vmatpush.msk.msrb.mxu1 %vm2087_vm2, %v303_v26 }
 0x125   : > { %1349 = vmatpush.msk.msrb.mxu3 %vm2087_vm2, %v370_v34  ;;  %vm1050_vm2 = vcmask 1042434  }
 0x126   : > { %328 = vmatpush.msrb.mxu1 %v302_v27 }
 0x127   : > { %395 = vmatpush.msrb.mxu3 %v369_v35 }
 0x12b   : > { %1336 = vmatmul.msk.f32.gmra.mxu1 %vm2086_vm3, %v193_v24 }
 0x12c   : > { %1342 = vmatmul.msk.f32.gmra.mxu3 %vm2086_vm3, %v272_v25 }
 0x1a0   : > { %v228_v28 = vpop.f32.mrf.mxu1 }
 0x1a1   : > { %1338 = vmatmul.msk.f32.vlgmr.msra.gmra.mxu2 %vm2086_vm3, %v228_v28 }
 0x1a2   : > { %1372 = vmatpush.msk.msra.mxu2 %vm445_vm4, %v435_v59 }
 0x1a4   : > { %1373 = vmatpush.msra.mxu2 %v434_v60 }
 0x1a6   : > { %1374 = vmatpush.msra.mxu2 %v433_v61 }
 0x1a7   : > { %v296_v29 = vpop.f32.mrf.mxu3 }
 0x1a8   : > { %v231_v30 = vpop.f32.mrf.mxu1  ;;  %1344 = vmatmul.msk.f32.vlgmr.msrb.gmra.mxu1 %vm2086_vm3, %v296_v29 }
 0x1a9   : > { %1339 = vmatmul.msk.f32.gmra.mxu2 %vm2086_vm3, %v231_v30 }
 0x1af   : > { %v299_v32 = vpop.f32.mrf.mxu3 }
 0x1b0   : > { %1345 = vmatmul.msk.f32.gmra.mxu1 %vm2086_vm3, %v299_v32 }
 0x1b1   : > { %1347 = vmatmul.msk.f32.vlgmr.msrb.gmra.mxu2 %vm2086_vm3, %v338_v31 }
 0x1b9   : > { %1348 = vmatmul.msk.f32.gmra.mxu2 %vm2086_vm3, %v339_v33 }
 0x224   : > { %v262_v36 = vpop.f32.mrf.mxu2 }
 0x225   : > { %v330_v40 = vpop.f32.mrf.mxu1  ;;  %v269_v45 = vadd.f32 %v1392_v42, %v262_v36 }
 0x227   : > { %v336_v49 = vadd.f32 %v330_v40, %v269_v45 }
 0x22c   : > { %v265_v37 = vpop.f32.mrf.mxu2 }
 0x22d   : > { %v270_v43 = vadd.f32 %v1392_v42, %v265_v37  ;;  %v333_v44 = vpop.f32.mrf.mxu1 }
 0x22f   : > { %v337_v47 = vadd.f32 %v333_v44, %v270_v43 }
 0x234   : > { %v363_v38 = vpop.f32.mrf.mxu2 }
 0x235   : > { %1350 = vmatmul.msk.f32.vlgmr.msrb.gmra.mxu3 %vm2086_vm3, %v363_v38 }
 0x23c   : > { %v366_v39 = vpop.f32.mrf.mxu2 }
 0x23d   : > { %1351 = vmatmul.msk.f32.gmra.mxu3 %vm2086_vm3, %v366_v39 }
 0x2b8   : > { %v397_v41 = vpop.f32.mrf.mxu3 }
 0x2b9   : > { %v403_v51 = vadd.f32 %v397_v41, %v336_v49 }
 0x2bb   : > { %v405_v54 = vmax.f32 %v403_v51, 0.0 }
 0x2bd   : > { %v413_v57 = vadd.f32 %v408_v56, %v405_v54 }
 0x2bf   : > { %v415_v58 = vmax.f32 %v413_v57, 0.0 }
 0x2c0   : > { %v400_v48 = vpop.f32.mrf.mxu3 }
 0x2c1   : > { %v404_v50 = vadd.f32 %v400_v48, %v337_v47 }
 0x2c3   : > { %v406_v52 = vmax.f32 %v404_v50, 0.0 }
 0x2c5   : > { %v414_v53 = vadd.f32 %v410_v46, %v406_v52 }
 0x2c7   : > { %v416_v55 = vmax.f32 %v414_v53, 0.0 }
 0x2c9   : > { %421 = vrot.lane.b32.xlu2 %v416_v55, %s1472_s11 }
 0x2d1   : > { %419 = vrot.lane.b32.xlu2 %v415_v58, %s1472_s11 }
 0x323   : > { %v422_v62 = vpop.permute.xlu2 %421 }
 0x324   : > { %v426_v0 = vsel %vm2086_vm3, %v190_v17, %v422_v62 }
 0x325   : > { %v428_v1 = vmul.f32 3.1622777, %v426_v0 }
 0x327   : > { %v1619_v2 = vadd.f32 %v430_v63, %v428_v1 }
 0x329   : > { %1354 = vmatmul.msk.f32.vlgmr.msra.gmra.mxu2 %vm438_vm5, %v1619_v2 }
 0x32b   : > { %v420_v3 = vpop.permute.xlu2 %419 }
 0x32c   : > { %v425_v5 = vsel %vm2086_vm3, %v189_v19, %v420_v3  ;;  %vm1048_vm3 = vcmask 1041409  }
 0x32d   : > { %v427_v6 = vmul.f32 3.1622777, %v425_v5 }
 0x32f   : > { %v1629_v7 = vadd.f32 %v429_v4, %v427_v6 }
 0x331   : > { %1353 = vmatmul.msk.f32.vlgmr.msrb.gmra.mxu0 %vm438_vm5, %v1629_v7 }
 0x3ac   : > { %v469_v9 = vpop.f32.mrf.mxu2 }
 0x3ad   : > { %v1636_v10 = vadd.f32 %v1393_v8, %v469_v9 }
 0x3ae   : > { %v466_v11 = vpop.f32.mrf.mxu0 }
 0x3af   : > { %v467_v12 = vadd.f32 %v1393_v8, %v466_v11  ;;  %504 = vrot.lane.b32.xlu1 %v1636_v10, %s1473_s24 }
 0x3b1   : > { %769 = vrot.lane.b32.xlu2 %v467_v12, %s1474_s25  ;;  %502 = vrot.lane.b32.xlu0 %v467_v12, %s1473_s24  ;;  %v474_v13 = vrot.slane %v467_v12, 1  ;;  %v475_v14 = vrot.slane %v467_v12, 2  ;;  %v476_v15 = vrot.slane %v467_v12, 3  ;;  %v477_v16 = vrot.slane %v467_v12, 4 }
 0x3b2   : > { %v478_v17 = vrot.slane %v467_v12, 5  ;;  %v479_v18 = vrot.slane %v467_v12, 6  ;;  %v480_v19 = vrot.slane %v467_v12, 7  ;;  %v482_v20 = vperm.slane %v467_v12, 0 }
 0x3b3   : > { %v483_v21 = vperm.slane %v474_v13, 0  ;;  %v484_v22 = vperm.slane %v475_v14, 0  ;;  %v485_v23 = vperm.slane %v476_v15, 0  ;;  %v486_v24 = vperm.slane %v477_v16, 0 }
 0x3b4   : > { %v487_v26 = vperm.slane %v478_v17, 0  ;;  %v488_v27 = vperm.slane %v479_v18, 0  ;;  %v489_v28 = vperm.slane %v480_v19, 0 }
 0x3b9   : > { %771 = vrot.lane.b32.xlu0 %v1636_v10, %s1474_s25 }
 0x421   : > { %v1640_v25 = vpop.permute.xlu1 %504 }
 0x422   : > { %v1643_v29 = vmul.f32 %v1640_v25, %v482_v20  ;;  %v1646_v30 = vmul.f32 %v1640_v25, %v483_v21  ;;  %v1649_v31 = vmul.f32 %v1640_v25, %v484_v22  ;;  %v1652_v32 = vmul.f32 %v1640_v25, %v485_v23 }
 0x423   : > { %v1655_v33 = vmul.f32 %v1640_v25, %v486_v24  ;;  %v1658_v34 = vmul.f32 %v1640_v25, %v487_v26  ;;  %v1661_v35 = vmul.f32 %v1640_v25, %v488_v27  ;;  %v1664_v36 = vmul.f32 %v1640_v25, %v489_v28  ;;  %v1666_v37 = vpop.permute.xlu0 %502 }
 0x424   : > { %v530_v38 = vsel %vm529_vm6, %v1643_v29, -inf  ;;  %v539_v39 = vsel %vm529_vm6, %v1646_v30, -inf  ;;  %v548_v40 = vsel %vm529_vm6, %v1649_v31, -inf  ;;  %v557_v41 = vsel %vm529_vm6, %v1652_v32, -inf }
 0x425   : > { %v566_v42 = vsel %vm529_vm6, %v1655_v33, -inf  ;;  %v575_v43 = vsel %vm529_vm6, %v1658_v34, -inf  ;;  %v584_v44 = vsel %vm529_vm6, %v1661_v35, -inf  ;;  %v593_v45 = vsel %vm529_vm6, %v1664_v36, -inf }
 0x426   : > { %v1685_v46 = vmul.f32 %v1666_v37, %v482_v20  ;;  %v1688_v47 = vmul.f32 %v1666_v37, %v483_v21  ;;  %v1691_v48 = vmul.f32 %v1666_v37, %v484_v22  ;;  %v1694_v49 = vmul.f32 %v1666_v37, %v485_v23 }
 0x427   : > { %v1697_v50 = vmul.f32 %v1666_v37, %v486_v24  ;;  %v1700_v51 = vmul.f32 %v1666_v37, %v487_v26  ;;  %v1703_v52 = vmul.f32 %v1666_v37, %v488_v27  ;;  %v1706_v53 = vmul.f32 %v1666_v37, %v489_v28 }
 0x428   : > { %v528_v54 = vsel %vm438_vm5, %v1685_v46, -inf  ;;  %v538_v55 = vsel %vm438_vm5, %v1688_v47, -inf  ;;  %v547_v56 = vsel %vm438_vm5, %v1691_v48, -inf  ;;  %v556_v57 = vsel %vm438_vm5, %v1694_v49, -inf }
 0x429   : > { %v531_v58 = vmax.f32 %v528_v54, %v530_v38  ;;  %v540_v59 = vmax.f32 %v538_v55, %v539_v39  ;;  %v549_v60 = vmax.f32 %v547_v56, %v548_v40  ;;  %v558_v61 = vmax.f32 %v556_v57, %v557_v41  ;;  %v1037_v54 = vld [vmem:[%s2084_s1 + $0xf8] sm:$0xf]  ;;  %v1036_v55 = vld [vmem:[%s2084_s1 + $0xf0] sm:$0xff] }
 0x42a   : > { %v565_v62 = vsel %vm438_vm5, %v1697_v50, -inf  ;;  %v574_v63 = vsel %vm438_vm5, %v1700_v51, -inf  ;;  %v583_v0 = vsel %vm438_vm5, %v1703_v52, -inf  ;;  %v592_v1 = vsel %vm438_vm5, %v1706_v53, -inf  ;;  %1355 = vmatpush.msk.msra.mxu1 %vm445_vm4, %v1037_v54 }
 0x42b   : > { %v532_v3 = vrot.slane %v531_v58, 4  ;;  %v541_v4 = vrot.slane %v540_v59, 4  ;;  %v550_v5 = vrot.slane %v549_v60, 4  ;;  %v559_v6 = vrot.slane %v558_v61, 4 }
 0x42c   : > { %v567_v8 = vmax.f32 %v565_v62, %v566_v42  ;;  %v576_v9 = vmax.f32 %v574_v63, %v575_v43  ;;  %v585_v11 = vmax.f32 %v583_v0, %v584_v44  ;;  %v594_v12 = vmax.f32 %v592_v1, %v593_v45  ;;  %v1035_v62 = vld [vmem:[%s2084_s1 + $0xe8] sm:$0xff]  ;;  %1084 = vmatpush.msra.mxu1 %v1036_v55 }
 0x42d   : > { %v533_v13 = vmax.f32 %v531_v58, %v532_v3  ;;  %v542_v14 = vmax.f32 %v540_v59, %v541_v4  ;;  %v551_v15 = vmax.f32 %v549_v60, %v550_v5  ;;  %v560_v16 = vmax.f32 %v558_v61, %v559_v6 }
 0x42e   : > { %v568_v17 = vrot.slane %v567_v8, 4  ;;  %v577_v18 = vrot.slane %v576_v9, 4  ;;  %v586_v19 = vrot.slane %v585_v11, 4  ;;  %v595_v20 = vrot.slane %v594_v12, 4  ;;  %1085 = vmatpush.msra.mxu1 %v1035_v62 }
 0x42f   : > { %v534_v21 = vrot.slane %v533_v13, 2  ;;  %v543_v22 = vrot.slane %v542_v14, 2  ;;  %v552_v23 = vrot.slane %v551_v15, 2  ;;  %v561_v24 = vrot.slane %v560_v16, 2 }
 0x430   : > { %v569_v26 = vmax.f32 %v567_v8, %v568_v17  ;;  %v578_v27 = vmax.f32 %v576_v9, %v577_v18  ;;  %v587_v28 = vmax.f32 %v585_v11, %v586_v19  ;;  %v596_v38 = vmax.f32 %v594_v12, %v595_v20 }
 0x431   : > { %v535_v39 = vmax.f32 %v533_v13, %v534_v21  ;;  %v544_v40 = vmax.f32 %v542_v14, %v543_v22  ;;  %v553_v41 = vmax.f32 %v551_v15, %v552_v23  ;;  %v562_v42 = vmax.f32 %v560_v16, %v561_v24 }
 0x432   : > { %v570_v43 = vrot.slane %v569_v26, 2  ;;  %v579_v44 = vrot.slane %v578_v27, 2  ;;  %v588_v45 = vrot.slane %v587_v28, 2  ;;  %v597_v63 = vrot.slane %v596_v38, 2 }
 0x433   : > { %v536_v56 = vrot.slane %v535_v39, 1  ;;  %v545_v57 = vrot.slane %v544_v40, 1  ;;  %v554_v58 = vrot.slane %v553_v41, 1  ;;  %v563_v59 = vrot.slane %v562_v42, 1 }
 0x434   : > { %v571_v60 = vmax.f32 %v569_v26, %v570_v43  ;;  %v580_v61 = vmax.f32 %v578_v27, %v579_v44  ;;  %v589_v8 = vmax.f32 %v587_v28, %v588_v45  ;;  %v598_v16 = vmax.f32 %v596_v38, %v597_v63 }
 0x435   : > { %v537_v0 = vmax.f32 %v535_v39, %v536_v56  ;;  %v546_v1 = vmax.f32 %v544_v40, %v545_v57  ;;  %v555_v3 = vmax.f32 %v553_v41, %v554_v58  ;;  %v564_v4 = vmax.f32 %v562_v42, %v563_v59  ;;  %v1759_v56 = vpop.permute.xlu2 %769 }
 0x436   : > { %v572_v5 = vrot.slane %v571_v60, 1  ;;  %v581_v6 = vrot.slane %v580_v61, 1  ;;  %v481_v23 = vrot.slane %v1636_v10, 1  ;;  %v490_v26 = vperm.slane %v1636_v10, 0 }
 0x437   : > { %v619_v9 = vsub.f32 %v1685_v46, %v537_v0  ;;  %v621_v11 = vsub.f32 %v1688_v47, %v546_v1  ;;  %v623_v12 = vsub.f32 %v1691_v48, %v555_v3  ;;  %v625_v13 = vsub.f32 %v1694_v49, %v564_v4 }
 0x438   : > { %v573_v14 = vmax.f32 %v571_v60, %v572_v5  ;;  %v620_v15 = vsub.f32 %v1643_v29, %v537_v0  ;;  %v622_v20 = vsub.f32 %v1646_v30, %v546_v1  ;;  %v582_v21 = vmax.f32 %v580_v61, %v581_v6 }
 0x439   : > { %v639_v17 = vmul.f32 1.442695, %v619_v9  ;;  %v643_v18 = vmul.f32 1.442695, %v621_v11  ;;  %v647_v19 = vmul.f32 1.442695, %v623_v12  ;;  %v624_v47 = vsub.f32 %v1649_v31, %v555_v3 }
 0x43a   : > { %v627_v22 = vsub.f32 %v1697_v50, %v573_v14  ;;  %v651_v46 = vmul.f32 1.442695, %v625_v13  ;;  %v626_v48 = vsub.f32 %v1652_v32, %v564_v4  ;;  %v590_v49 = vrot.slane %v589_v8, 1 }
 0x43b   : > { %1398 = vpow2.f32 %v639_v17  ;;  %v641_v24 = vmul.f32 1.442695, %v620_v15  ;;  %v628_v30 = vsub.f32 %v1655_v33, %v573_v14  ;;  %v645_v27 = vmul.f32 1.442695, %v622_v20  ;;  %v1792_v15 = vpop.permute.xlu0 %771 }
 0x43c   : > { %1400 = vpow2.f32 %v643_v18  ;;  %v655_v29 = vmul.f32 1.442695, %v627_v22  ;;  %v629_v50 = vsub.f32 %v1700_v51, %v582_v21  ;;  %v649_v28 = vmul.f32 1.442695, %v624_v47 }
 0x43d   : > { %1402 = vpow2.f32 %v647_v19  ;;  %v599_v31 = vrot.slane %v598_v16, 1  ;;  %v630_v32 = vsub.f32 %v1658_v34, %v582_v21  ;;  %v653_v38 = vmul.f32 1.442695, %v626_v48 }
 0x43e   : > { %1404 = vpow2.f32 %v651_v46  ;;  %v591_v39 = vmax.f32 %v589_v8, %v590_v49  ;;  %v1749_v40 = vmul.f32 %v1666_v37, %v490_v26  ;;  %v657_v10 = vmul.f32 1.442695, %v628_v30 }
 0x43f   : > { %1406 = vpow2.f32 %v655_v29  ;;  %v1752_v33 = vmul.f32 %v1640_v25, %v490_v26  ;;  %v491_v51 = vperm.slane %v481_v23, 0  ;;  %v1754_v43 = vmax.f32 %v598_v16, %v599_v31 }
 0x440   : > { %1408 = vpow2.f32 %v641_v24  ;;  %v659_v45 = vmul.f32 1.442695, %v629_v50  ;;  %v661_v34 = vmul.f32 1.442695, %v630_v32  ;;  %v631_v54 = vsub.f32 %v1703_v52, %v591_v39 }
 0x441   : > { %v1399_v41 = vpop.eup %1398  ;;  %1410 = vpow2.f32 %v645_v27  ;;  %v632_v57 = vsub.f32 %v1661_v35, %v591_v39  ;;  %v1763_v58 = vmul.f32 %v1666_v37, %v491_v51  ;;  %v1766_v59 = vmul.f32 %v1640_v25, %v491_v51 }
 0x442   : > { %v1401_v42 = vpop.eup %1400  ;;  %1412 = vpow2.f32 %v649_v28  ;;  %v1770_v60 = vsel %vm438_vm5, %v1749_v40, -inf  ;;  %v679_v52 = vsel %vm438_vm5, %v1399_v41, 0.0  ;;  %v775_v62 = vmul.f32 %v1399_v41, %v1759_v56 }
 0x443   : > { %v1403_v44 = vpop.eup %1402  ;;  %1414 = vpow2.f32 %v653_v38  ;;  %v1778_v35 = vsel %vm529_vm6, %v1752_v33, -inf  ;;  %v688_v63 = vsel %vm438_vm5, %v1401_v42, 0.0  ;;  %v777_v25 = vmul.f32 %v1401_v42, %v1759_v56 }
 0x444   : > { %v1757_v55 = vpop.eup %1404  ;;  %1416 = vpow2.f32 %v657_v10  ;;  %v633_v0 = vsub.f32 %v1706_v53, %v1754_v43  ;;  %v634_v1 = vsub.f32 %v1664_v36, %v1754_v43  ;;  %v697_v4 = vsel %vm438_vm5, %v1403_v44, 0.0 }
 0x445   : > { %v1772_v61 = vpop.eup %1406  ;;  %v779_v6 = vmul.f32 %v1403_v44, %v1759_v56  ;;  %v663_v8 = vmul.f32 1.442695, %v631_v54  ;;  %1418 = vpow2.f32 %v661_v34  ;;  %v665_v13 = vmul.f32 1.442695, %v632_v57 }
 0x446   : > { %v1409_v37 = vpop.eup %1408  ;;  %v706_v53 = vsel %vm438_vm5, %v1757_v55, 0.0  ;;  %1420 = vpow2.f32 %v659_v45  ;;  %v667_v47 = vmul.f32 1.442695, %v633_v0  ;;  %v795_v23 = vsel %vm438_vm5, %v775_v62, 0.0 }
 0x447   : > { %v1411_v3 = vpop.eup %1410  ;;  %v680_v5 = vsel %vm529_vm6, %v1409_v37, 0.0  ;;  %v776_v20 = vmul.f32 %v1409_v37, %v1792_v15  ;;  %1422 = vpow2.f32 %v663_v8  ;;  %v715_v29 = vsel %vm438_vm5, %v1772_v61, 0.0 }
 0x448   : > { %v1413_v9 = vpop.eup %1412  ;;  %v681_v11 = vadd.f32 %v680_v5, %v679_v52  ;;  %v689_v12 = vsel %vm529_vm6, %v1411_v3, 0.0  ;;  %v778_v46 = vmul.f32 %v1411_v3, %v1792_v15  ;;  %1424 = vpow2.f32 %v665_v13 }
 0x449   : > { %v1415_v14 = vpop.eup %1414  ;;  %v690_v36 = vadd.f32 %v689_v12, %v688_v63  ;;  %v698_v16 = vsel %vm529_vm6, %v1413_v9, 0.0  ;;  %v804_v30 = vsel %vm438_vm5, %v777_v25, 0.0  ;;  %v796_v32 = vsel %vm529_vm6, %v776_v20, 0.0 }
 0x44a   : > { %v682_v17 = vrot.slane %v681_v11, 4  ;;  %v699_v18 = vadd.f32 %v698_v16, %v697_v4  ;;  %v707_v19 = vsel %vm529_vm6, %v1415_v14, 0.0  ;;  %v1417_v21 = vpop.eup %1416  ;;  %v805_v41 = vsel %vm529_vm6, %v778_v46, 0.0 }
 0x44b   : > { %v691_v22 = vrot.slane %v690_v36, 4  ;;  %v708_v26 = vadd.f32 %v707_v19, %v706_v53  ;;  %v1419_v27 = vpop.eup %1418  ;;  %v716_v31 = vsel %vm529_vm6, %v1417_v21, 0.0  ;;  %1426 = vpow2.f32 %v667_v47 }
 0x44c   : > { %v683_v48 = vadd.f32 %v682_v17, %v681_v11  ;;  %v700_v49 = vrot.slane %v699_v18, 4  ;;  %v1804_v38 = vpop.eup %1420  ;;  %v669_v10 = vmul.f32 1.442695, %v634_v1  ;;  %v780_v42 = vmul.f32 %v1413_v9, %v1792_v15 }
 0x44d   : > { %v692_v24 = vadd.f32 %v691_v22, %v690_v36  ;;  %v782_v51 = vmul.f32 %v1415_v14, %v1792_v15  ;;  %v813_v43 = vsel %vm438_vm5, %v779_v6, 0.0  ;;  %v1423_v45 = vpop.eup %1422  ;;  %v797_v34 = vadd.f32 %v796_v32, %v795_v23 }
 0x44e   : > { %v684_v50 = vrot.slane %v683_v48, 2  ;;  %v701_v28 = vadd.f32 %v700_v49, %v699_v18  ;;  %1428 = vpow2.f32 %v669_v10  ;;  %v709_v54 = vrot.slane %v708_v26, 4  ;;  %v1425_v52 = vpop.eup %1424 }
 0x44f   : > { %v693_v39 = vrot.slane %v692_v24, 2  ;;  %v717_v57 = vadd.f32 %v716_v31, %v715_v29  ;;  %v806_v62 = vadd.f32 %v805_v41, %v804_v30  ;;  %v724_v25 = vsel %vm438_vm5, %v1804_v38, 0.0 }
 0x450   : > { %v702_v44 = vrot.slane %v701_v28, 2  ;;  %v685_v37 = vadd.f32 %v684_v50, %v683_v48  ;;  %v710_v1 = vadd.f32 %v709_v54, %v708_v26  ;;  %v725_v4 = vsel %vm529_vm6, %v1419_v27, 0.0 }
 0x451   : > { %v694_v63 = vadd.f32 %v693_v39, %v692_v24  ;;  %v718_v3 = vrot.slane %v717_v57, 4  ;;  %v784_v5 = vmul.f32 %v1417_v21, %v1792_v15  ;;  %v814_v6 = vsel %vm529_vm6, %v780_v42, 0.0  ;;  %v1427_v11 = vpop.eup %1426 }
 0x452   : > { %v703_v0 = vadd.f32 %v702_v44, %v701_v28  ;;  %v726_v8 = vadd.f32 %v725_v4, %v724_v25  ;;  %v733_v9 = vsel %vm438_vm5, %v1423_v45, 0.0  ;;  %v798_v12 = vrot.slane %v797_v34, 4 }
 0x453   : > { %v711_v13 = vrot.slane %v710_v1, 2  ;;  %v719_v14 = vadd.f32 %v718_v3, %v717_v57  ;;  %v734_v53 = vsel %vm529_vm6, %v1425_v52, 0.0  ;;  %v807_v36 = vrot.slane %v806_v62, 4 }
 0x454   : > { %v727_v16 = vrot.slane %v726_v8, 4  ;;  %v735_v17 = vadd.f32 %v734_v53, %v733_v9  ;;  %v742_v18 = vsel %vm438_vm5, %v1427_v11, 0.0  ;;  %v1429_v19 = vpop.eup %1428  ;;  %v686_v20 = vrot.slane %v685_v37, 1 }
 0x455   : > { %v695_v22 = vrot.slane %v694_v63, 1  ;;  %v704_v21 = vrot.slane %v703_v0, 1  ;;  %v712_v46 = vadd.f32 %v711_v13, %v710_v1  ;;  %v720_v47 = vrot.slane %v719_v14, 2 }
 0x456   : > { %v728_v48 = vadd.f32 %v727_v16, %v726_v8  ;;  %v736_v49 = vrot.slane %v735_v17, 4  ;;  %v743_v23 = vsel %vm529_vm6, %v1429_v19, 0.0  ;;  %v786_v29 = vmul.f32 %v1419_v27, %v1792_v15 }
 0x457   : > { %v815_v24 = vadd.f32 %v814_v6, %v813_v43  ;;  %v744_v26 = vadd.f32 %v743_v23, %v742_v18  ;;  %v781_v30 = vmul.f32 %v1757_v55, %v1759_v56  ;;  %v799_v50 = vadd.f32 %v798_v12, %v797_v34 }
 0x458   : > { %v823_v28 = vsel %vm529_vm6, %v782_v51, 0.0  ;;  %v729_v31 = vrot.slane %v728_v48, 2  ;;  %v737_v32 = vadd.f32 %v736_v49, %v735_v17  ;;  %v808_v39 = vadd.f32 %v807_v36, %v806_v62 }
 0x459   : > { %v1823_v41 = vadd.f32 %v686_v20, %v685_v37  ;;  %v745_v10 = vrot.slane %v744_v26, 4  ;;  %v783_v42 = vmul.f32 %v1772_v61, %v1759_v56  ;;  %v1827_v44 = vadd.f32 %v695_v22, %v694_v63 }
 0x45a   : > { %v1829_v27 = vadd.f32 %v704_v21, %v703_v0  ;;  %v713_v43 = vrot.slane %v712_v46, 1  ;;  %v721_v54 = vadd.f32 %v720_v47, %v719_v14  ;;  %v738_v57 = vrot.slane %v737_v32, 2 }
 0x45b   : > { %v746_v55 = vadd.f32 %v745_v10, %v744_v26  ;;  %v816_v34 = vrot.slane %v815_v24, 4  ;;  %v822_v51 = vsel %vm438_vm5, %v781_v30, 0.0  ;;  %v730_v25 = vadd.f32 %v729_v31, %v728_v48 }
 0x45c   : > { %v785_v62 = vmul.f32 %v1804_v38, %v1759_v56  ;;  %v787_v37 = vmul.f32 %v1423_v45, %v1759_v56  ;;  %v800_v1 = vrot.slane %v799_v50, 2  ;;  %v809_v3 = vrot.slane %v808_v39, 2 }
 0x45d   : > { %v817_v61 = vadd.f32 %v816_v34, %v815_v24  ;;  %v824_v63 = vadd.f32 %v823_v28, %v822_v51  ;;  %v831_v0 = vsel %vm438_vm5, %v783_v42, 0.0  ;;  %v1836_v4 = vadd.f32 %v713_v43, %v712_v46 }
 0x45e   : > { %v722_v6 = vrot.slane %v721_v54, 1  ;;  %v788_v8 = vmul.f32 %v1425_v52, %v1792_v15  ;;  %v789_v9 = vmul.f32 %v1427_v11, %v1759_v56  ;;  %v739_v12 = vadd.f32 %v738_v57, %v737_v32 }
 0x45f   : > { %v747_v13 = vrot.slane %v746_v55, 2  ;;  %v825_v14 = vrot.slane %v824_v63, 4  ;;  %v832_v38 = vsel %vm529_vm6, %v784_v5, 0.0  ;;  %v731_v53 = vrot.slane %v730_v25, 1 }
 0x460   : > { %v790_v45 = vmul.f32 %v1429_v19, %v1792_v15  ;;  %v801_v36 = vadd.f32 %v800_v1, %v799_v50  ;;  %v833_v16 = vadd.f32 %v832_v38, %v831_v0  ;;  %v810_v17 = vadd.f32 %v809_v3, %v808_v39 }
 0x461   : > { %v818_v18 = vrot.slane %v817_v61, 2  ;;  %v826_v20 = vadd.f32 %v825_v14, %v824_v63  ;;  %v840_v22 = vsel %vm438_vm5, %v785_v62, 0.0  ;;  %v841_v52 = vsel %vm529_vm6, %v786_v29, 0.0 }
 0x462   : > { %v834_v21 = vrot.slane %v833_v16, 4  ;;  %v849_v11 = vsel %vm438_vm5, %v787_v37, 0.0  ;;  %v850_v46 = vsel %vm529_vm6, %v788_v8, 0.0  ;;  %v740_v47 = vrot.slane %v739_v12, 1 }
 0x463   : > { %v748_v48 = vadd.f32 %v747_v13, %v746_v55  ;;  %v827_v5 = vrot.slane %v826_v20, 2  ;;  %v842_v49 = vadd.f32 %v841_v52, %v840_v22  ;;  %v851_v19 = vadd.f32 %v850_v46, %v849_v11 }
 0x464   : > { %v835_v23 = vadd.f32 %v834_v21, %v833_v16  ;;  %v858_v24 = vsel %vm438_vm5, %v789_v9, 0.0  ;;  %v859_v26 = vsel %vm529_vm6, %v790_v45, 0.0  ;;  %v802_v30 = vrot.slane %v801_v36, 1 }
 0x465   : > { %v819_v50 = vadd.f32 %v818_v18, %v817_v61  ;;  %v843_v28 = vrot.slane %v842_v49, 4  ;;  %v860_v31 = vadd.f32 %v859_v26, %v858_v24  ;;  %v828_v32 = vadd.f32 %v827_v5, %v826_v20 }
 0x466   : > { %v836_v29 = vrot.slane %v835_v23, 2  ;;  %v852_v39 = vrot.slane %v851_v19, 4  ;;  %1430 = vrcp.f32 %v1823_v41  ;;  %v749_v10 = vrot.slane %v748_v48, 1 }
 0x467   : > { %v811_v42 = vrot.slane %v810_v17, 1  ;;  %v844_v43 = vadd.f32 %v843_v28, %v842_v49  ;;  %v861_v57 = vrot.slane %v860_v31, 4  ;;  %v1849_v55 = vadd.f32 %v722_v6, %v721_v54 }
 0x468   : > { %v837_v34 = vadd.f32 %v836_v29, %v835_v23  ;;  %v853_v51 = vadd.f32 %v852_v39, %v851_v19  ;;  %1432 = vrcp.f32 %v1827_v44  ;;  %v1852_v62 = vadd.f32 %v731_v53, %v730_v25 }
 0x469   : > { %v820_v37 = vrot.slane %v819_v50, 1  ;;  %v845_v1 = vrot.slane %v844_v43, 2  ;;  %v862_v3 = vadd.f32 %v861_v57, %v860_v31  ;;  %v1854_v61 = vadd.f32 %v740_v47, %v739_v12 }
 0x46a   : > { %v829_v63 = vrot.slane %v828_v32, 1  ;;  %v854_v0 = vrot.slane %v853_v51, 2  ;;  %v894_v8 = vand.u32 2147483647, %v1823_v41  ;;  %v1857_v9 = vadd.f32 %v749_v10, %v748_v48 }
 0x46b   : > { %v803_v13 = vadd.f32 %v802_v30, %v801_v36  ;;  %v1859_v54 = vadd.f32 %v811_v42, %v810_v17  ;;  %v896_v6 = vand.u32 2147483648, %v1823_v41  ;;  %v838_v38 = vrot.slane %v837_v34, 1 }
 0x46c   : > { %v1431_v14 = vpop.eup %1430  ;;  %v846_v25 = vadd.f32 %v845_v1, %v844_v43  ;;  %v863_v53 = vrot.slane %v862_v3, 2  ;;  %1434 = vrcp.f32 %v1829_v27  ;;  %v1863_v45 = vadd.f32 %v820_v37, %v819_v50 }
 0x46d   : > { %v1865_v12 = vadd.f32 %v854_v0, %v853_v51  ;;  %v886_v16 = vmul.f32 %v1431_v14, %v1823_v41  ;;  %vm890_vm7 = vweird.f32 %v1823_v41  ;;  %v1869_v36 = vadd.f32 %v829_v63, %v828_v32 }
 0x46e   : > { %v1433_v18 = vpop.eup %1432  ;;  %vm1871_vm8 = vcmp.eq.f32.partialorder %v894_v8, 8.507059e+37  ;;  %v909_v20 = vand.u32 2147483647, %v1827_v44  ;;  %v911_v22 = vand.u32 2147483648, %v1827_v44  ;;  %v897_v52 = vor.u32 1.1754944e-38, %v896_v6 }
 0x46f   : > { %v887_v21 = vsub.f32 1.0, %v886_v16  ;;  %v901_v11 = vmul.f32 %v1433_v18, %v1827_v44  ;;  %vm905_vm9 = vweird.f32 %v1827_v44  ;;  %v1879_v46 = vadd.f32 %v838_v38, %v837_v34 }
 0x470   : > { %v847_v47 = vrot.slane %v846_v25, 1  ;;  %v1881_v48 = vadd.f32 %v863_v53, %v862_v3  ;;  %vm891_vm10 = vweird.f32 %v1431_v14  ;;  %v856_v5 = vrot.slane %v1865_v12, 1 }
 0x471   : > { %v888_v49 = vmul.f32 %v1431_v14, %v887_v21  ;;  %v902_v23 = vsub.f32 1.0, %v901_v11  ;;  %vm920_vm11 = vweird.f32 %v1829_v27  ;;  %1436 = vrcp.f32 %v1836_v4  ;;  %vm892_vm14 = vmor %vm890_vm7, %vm891_vm10 }
 0x472   : > { %v1435_v19 = vpop.eup %1434  ;;  %vm1886_vm12 = vcmp.eq.f32.partialorder %v909_v20, 8.507059e+37  ;;  %v912_v26 = vor.u32 1.1754944e-38, %v911_v22  ;;  %v924_v30 = vand.u32 2147483647, %v1829_v27  ;;  %v926_v50 = vand.u32 2147483648, %v1829_v27 }
 0x473   : > { %v889_v28 = vadd.f32 %v1431_v14, %v888_v49  ;;  %v903_v31 = vmul.f32 %v1433_v18, %v902_v23  ;;  %vm906_vm13 = vweird.f32 %v1433_v18  ;;  %v916_v32 = vmul.f32 %v1435_v19, %v1829_v27 }
 0x474   : > { %v1893_v29 = vadd.f32 %v847_v47, %v846_v25  ;;  %v865_v39 = vrot.slane %v1881_v48, 1  ;;  %v939_v10 = vand.u32 2147483647, %v1836_v4  ;;  %1438 = vrcp.f32 %v1849_v55  ;;  %vm1906_vm15 = vmor %vm905_vm9, %vm906_vm13 }
 0x475   : > { %v893_v42 = vsel %vm892_vm14, %v1431_v14, %v889_v28  ;;  %v904_v43 = vadd.f32 %v1433_v18, %v903_v31  ;;  %v917_v57 = vsub.f32 1.0, %v916_v32  ;;  %v941_v34 = vand.u32 2147483648, %v1836_v4 }
 0x476   : > { %v898_v51 = vsel %vm1871_vm8, %v897_v52, %v893_v42  ;;  %vm1910_vm0 = vcmp.eq.f32.partialorder %v924_v30, 8.507059e+37  ;;  %v927_v1 = vor.u32 1.1754944e-38, %v926_v50  ;;  %1440 = vrcp.f32 %v1852_v62 }
 0x477   : > { %v1437_v3 = vpop.eup %1436  ;;  %v908_v63 = vsel %vm1906_vm15, %v1433_v18, %v904_v43  ;;  %v918_v0 = vmul.f32 %v1435_v19, %v917_v57  ;;  %vm921_vm1 = vweird.f32 %v1435_v19  ;;  %v954_v8 = vand.u32 2147483647, %v1849_v55 }
 0x478   : > { %v931_v44 = vmul.f32 %v1437_v3, %v1836_v4  ;;  %vm935_vm7 = vweird.f32 %v1836_v4  ;;  %vm1920_vm8 = vcmp.eq.f32.partialorder %v939_v10, 8.507059e+37  ;;  %v956_v14 = vand.u32 2147483648, %v1849_v55  ;;  %vm922_vm10 = vmor %vm920_vm11, %vm921_vm1 }
 0x479   : > { %v899_v38 = vmul.f32 %v898_v51, %v803_v13  ;;  %v919_v25 = vadd.f32 %v1435_v19, %v918_v0  ;;  %v942_v53 = vor.u32 1.1754944e-38, %v941_v34  ;;  %vm950_vm9 = vweird.f32 %v1849_v55 }
 0x47a   : > { %v1439_v16 = vpop.eup %1438  ;;  %v913_v18 = vsel %vm1886_vm12, %v912_v26, %v908_v63  ;;  %v932_v17 = vsub.f32 1.0, %v931_v44  ;;  %v969_v20 = vand.u32 2147483647, %v1852_v62  ;;  %1442 = vrcp.f32 %v1854_v61 }
 0x47b   : > { %v923_v22 = vsel %vm922_vm10, %v1435_v19, %v919_v25  ;;  %v946_v21 = vmul.f32 %v1439_v16, %v1849_v55  ;;  %vm1933_vm13 = vcmp.eq.f32.partialorder %v954_v8, 8.507059e+37  ;;  %vm965_vm14 = vweird.f32 %v1852_v62 }
 0x47c   : > { %v971_v52 = vand.u32 2147483648, %v1852_v62  ;;  %v1441_v11 = vpop.eup %1440  ;;  %v928_v27 = vsel %vm1910_vm0, %v927_v1, %v923_v22  ;;  %v933_v47 = vmul.f32 %v1437_v3, %v932_v17  ;;  %vm936_vm11 = vweird.f32 %v1437_v3 }
 0x47d   : > { %v957_v49 = vor.u32 1.1754944e-38, %v956_v14  ;;  %v914_v23 = vmul.f32 %v913_v18, %v1859_v54  ;;  %v947_v19 = vsub.f32 1.0, %v946_v21  ;;  %v961_v24 = vmul.f32 %v1441_v11, %v1852_v62  ;;  %vm937_vm0 = vmor %vm935_vm7, %vm936_vm11 }
 0x47e   : > { %v984_v26 = vand.u32 2147483647, %v1854_v61  ;;  %v934_v30 = vadd.f32 %v1437_v3, %v933_v47  ;;  %vm951_vm12 = vweird.f32 %v1439_v16  ;;  %vm1944_vm15 = vcmp.eq.f32.partialorder %v969_v20, 8.507059e+37 }
 0x47f   : > { %1444 = vrcp.f32 %v1857_v9  ;;  %v929_v28 = vmul.f32 %v928_v27, %v1863_v45  ;;  %v948_v31 = vmul.f32 %v1439_v16, %v947_v19  ;;  %v962_v54 = vsub.f32 1.0, %v961_v24  ;;  %vm952_vm7 = vmor %vm950_vm9, %vm951_vm12 }
 0x480   : > { %v972_v32 = vor.u32 1.1754944e-38, %v971_v52  ;;  %vm980_vm1 = vweird.f32 %v1854_v61  ;;  %v1443_v10 = vpop.eup %1442  ;;  %v938_v42 = vsel %vm937_vm0, %v1437_v3, %v934_v30  ;;  %vm966_vm10 = vweird.f32 %v1441_v11 }
 0x481   : > { %v943_v43 = vsel %vm1920_vm8, %v942_v53, %v938_v42  ;;  %v949_v57 = vadd.f32 %v1439_v16, %v948_v31  ;;  %v963_v34 = vmul.f32 %v1441_v11, %v962_v54  ;;  %v976_v45 = vmul.f32 %v1443_v10, %v1854_v61  ;;  %vm967_vm8 = vmor %vm965_vm14, %vm966_vm10 }
 0x482   : > { %v944_v4 = vmul.f32 %v943_v43, %v1869_v36  ;;  %vm1960_vm11 = vcmp.eq.f32.partialorder %v984_v26, 8.507059e+37  ;;  %v986_v37 = vand.u32 2147483648, %v1854_v61  ;;  %v999_v41 = vand.u32 2147483647, %v1857_v9 }
 0x483   : > { %v953_v1 = vsel %vm952_vm7, %v1439_v16, %v949_v57  ;;  %v964_v3 = vadd.f32 %v1441_v11, %v963_v34  ;;  %v977_v63 = vsub.f32 1.0, %v976_v45  ;;  %v1049_v0 = vsel %vm1048_vm3, %v914_v23, %v899_v38 }
 0x484   : > { %v958_v36 = vsel %vm1933_vm13, %v957_v49, %v953_v1  ;;  %vm981_vm9 = vweird.f32 %v1443_v10  ;;  %v1051_v55 = vsel %vm1050_vm2, %v929_v28, %v1049_v0  ;;  %vm1052_vm12 = vcmask 1043459  }
 0x485   : > { %v1445_v8 = vpop.eup %1444  ;;  %v968_v44 = vsel %vm967_vm8, %v1441_v11, %v964_v3  ;;  %v978_v6 = vmul.f32 %v1443_v10, %v977_v63  ;;  %vm1054_vm0 = vcmask 1044484   ;;  %v959_v25 = vmul.f32 %v958_v36, %v1879_v46  ;;  %vm982_vm2 = vmor %vm980_vm1, %vm981_vm9 }
 0x486   : > { %v991_v14 = vmul.f32 %v1445_v8, %v1857_v9  ;;  %v973_v38 = vsel %vm1944_vm15, %v972_v32, %v968_v44  ;;  %v1001_v53 = vand.u32 2147483648, %v1857_v9  ;;  %v1053_v16 = vsel %vm1052_vm12, %v944_v4, %v1051_v55 }
 0x487   : > { %v979_v18 = vadd.f32 %v1443_v10, %v978_v6  ;;  %v987_v62 = vor.u32 1.1754944e-38, %v986_v37  ;;  %vm996_vm13 = vweird.f32 %v1445_v8  ;;  %v1055_v20 = vsel %vm1054_vm0, %v959_v25, %v1053_v16 }
 0x488   : > { %v992_v17 = vsub.f32 1.0, %v991_v14  ;;  %vm1056_vm14 = vcmask 1045509   ;;  %v603_v22 = vmax.f32 %v1770_v60, %v1778_v35  ;;  %v610_v46 = vsel %vm438_vm5, %v1763_v58, -inf }
 0x489   : > { %v974_v21 = vmul.f32 %v973_v38, %v1893_v29  ;;  %v983_v13 = vsel %vm982_vm2, %v1443_v10, %v979_v18  ;;  %v611_v11 = vsel %vm529_vm6, %v1766_v59, -inf  ;;  %v857_v61 = vadd.f32 %v856_v5, %v1865_v12 }
 0x48a   : > { %v993_v52 = vmul.f32 %v1445_v8, %v992_v17  ;;  %v988_v27 = vsel %vm1960_vm11, %v987_v62, %v983_v13  ;;  %v604_v47 = vrot.slane %v603_v22, 4  ;;  %v612_v49 = vmax.f32 %v610_v46, %v611_v11 }
 0x48b   : > { %vm995_vm15 = vweird.f32 %v1857_v9  ;;  %v1057_v35 = vsel %vm1056_vm14, %v974_v21, %v1055_v20  ;;  %vm1058_vm1 = vcmask 1046534   ;;  %v989_v29 = vmul.f32 %v988_v27, %v857_v61 }
 0x48c   : > { %v994_v60 = vadd.f32 %v1445_v8, %v993_v52  ;;  %vm997_vm10 = vmor %vm995_vm15, %vm996_vm13  ;;  %v1002_v23 = vor.u32 1.1754944e-38, %v1001_v53  ;;  %v605_v19 = vmax.f32 %v603_v22, %v604_v47  ;;  %v613_v24 = vrot.slane %v612_v49, 4 }
 0x48d   : > { %v866_v12 = vadd.f32 %v865_v39, %v1881_v48  ;;  %vm1000_vm7 = vcmp.eq.f32.partialorder %v999_v41, 8.507059e+37  ;;  %vm1060_vm11 = vcmask 1047559   ;;  %v1059_v30 = vsel %vm1058_vm1, %v989_v29, %v1057_v35 }
 0x48e   : > { %v998_v5 = vsel %vm997_vm10, %v1445_v8, %v994_v60  ;;  %v606_v50 = vrot.slane %v605_v19, 2  ;;  %v614_v28 = vmax.f32 %v612_v49, %v613_v24 }
 0x48f   : > { %v1003_v26 = vsel %vm1000_vm7, %v1002_v23, %v998_v5 }
 0x490   : > { %v1004_v9 = vmul.f32 %v1003_v26, %v866_v12  ;;  %v607_v31 = vmax.f32 %v605_v19, %v606_v50  ;;  %v615_v54 = vrot.slane %v614_v28, 2 }
 0x492   : > { %v1061_v32 = vsel %vm1060_vm11, %v1004_v9, %v1059_v30  ;;  %v608_v10 = vrot.slane %v607_v31, 1  ;;  %v616_v42 = vmax.f32 %v614_v28, %v615_v54 }
 0x493   : > { %1356 = vmatmul.msk.f32.vlgmr.msra.gmra.mxu1 %vm438_vm5, %v1061_v32 }
 0x494   : > { %v609_v43 = vmax.f32 %v607_v31, %v608_v10  ;;  %v617_v57 = vrot.slane %v616_v42, 1 }
 0x496   : > { %v618_v34 = vmax.f32 %v616_v42, %v617_v57  ;;  %v635_v48 = vsub.f32 %v1749_v40, %v609_v43  ;;  %v636_v39 = vsub.f32 %v1752_v33, %v609_v43 }
 0x498   : > { %v637_v45 = vsub.f32 %v1763_v58, %v618_v34  ;;  %v638_v4 = vsub.f32 %v1766_v59, %v618_v34  ;;  %v671_v51 = vmul.f32 1.442695, %v635_v48  ;;  %v673_v37 = vmul.f32 1.442695, %v636_v39 }
 0x49a   : > { %1446 = vpow2.f32 %v671_v51  ;;  %v675_v41 = vmul.f32 1.442695, %v637_v45  ;;  %v677_v1 = vmul.f32 1.442695, %v638_v4 }
 0x49b   : > { %1448 = vpow2.f32 %v673_v37 }
 0x49c   : > { %1450 = vpow2.f32 %v675_v41 }
 0x49d   : > { %1452 = vpow2.f32 %v677_v1 }
 0x4a0   : > { %v1447_v3 = vpop.eup %1446 }
 0x4a1   : > { %v1449_v63 = vpop.eup %1448  ;;  %v751_v0 = vsel %vm438_vm5, %v1447_v3, 0.0  ;;  %v791_v40 = vmul.f32 %v1447_v3, %v1759_v56 }
 0x4a2   : > { %v1451_v8 = vpop.eup %1450  ;;  %v752_v33 = vsel %vm529_vm6, %v1449_v63, 0.0  ;;  %v792_v58 = vmul.f32 %v1449_v63, %v1792_v15 }
 0x4a3   : > { %v1453_v59 = vpop.eup %1452  ;;  %v753_v36 = vadd.f32 %v752_v33, %v751_v0  ;;  %v760_v55 = vsel %vm438_vm5, %v1451_v8, 0.0  ;;  %v793_v44 = vmul.f32 %v1451_v8, %v1759_v56  ;;  %v867_v25 = vsel %vm438_vm5, %v791_v40, 0.0  ;;  %v1101_v33 = vld [vmem:[%s2084_s1 + $0x118] sm:$0xf] }
 0x4a4   : > { %v761_v6 = vsel %vm529_vm6, %v1453_v59, 0.0  ;;  %v794_v14 = vmul.f32 %v1453_v59, %v1792_v15  ;;  %v868_v38 = vsel %vm529_vm6, %v792_v58, 0.0  ;;  %v1100_v58 = vld [vmem:[%s2084_s1 + $0x110] sm:$0xff]  ;;  %1358 = vmatpush.msk.msrb.mxu2 %vm445_vm4, %v1101_v33  ;;  %v1099_v59 = vld [vmem:[%s2084_s1 + $0x108] sm:$0xff] }
 0x4a5   : > { %v754_v53 = vrot.slane %v753_v36, 4  ;;  %v762_v16 = vadd.f32 %v761_v6, %v760_v55  ;;  %v876_v18 = vsel %vm438_vm5, %v793_v44, 0.0  ;;  %v869_v22 = vadd.f32 %v868_v38, %v867_v25  ;;  %v1138_v25 = vld [vmem:[%s2084_s1 + $0x138] sm:$0xff] }
 0x4a6   : > { %v877_v62 = vsel %vm529_vm6, %v794_v14, 0.0  ;;  %1127 = vmatpush.msrb.mxu2 %v1100_v58  ;;  %v1139_v14 = vld [vmem:[%s2084_s1 + $0x140] sm:$0xff] }
 0x4a7   : > { %v755_v17 = vadd.f32 %v754_v53, %v753_v36  ;;  %v763_v20 = vrot.slane %v762_v16, 4  ;;  %v878_v56 = vadd.f32 %v877_v62, %v876_v18  ;;  %v870_v11 = vrot.slane %v869_v22, 4  ;;  %v1394_v36 = vld [vmem:[%s2084_s1 + $0x100] ss:$0 sm:$0xff]  ;;  %1159 = vmatpush.msra.mxu3 %v1139_v14  ;;  %v1136_v18 = vld [vmem:[%s2084_s1 + $0x128] sm:$0xff] }
 0x4a8   : > { %1128 = vmatpush.msrb.mxu2 %v1099_v59  ;;  %v1395_v62 = vld [vmem:[%s2084_s1 + $0x120] ss:$0 sm:$0xff] }
 0x4a9   : > { %v756_v46 = vrot.slane %v755_v17, 2  ;;  %v764_v21 = vadd.f32 %v763_v20, %v762_v16  ;;  %v879_v27 = vrot.slane %v878_v56, 4  ;;  %v871_v60 = vadd.f32 %v870_v11, %v869_v22  ;;  %1160 = vmatpush.msra.mxu3 %v1138_v25 }
 0x4ab   : > { %v757_v13 = vadd.f32 %v756_v46, %v755_v17  ;;  %v765_v52 = vrot.slane %v764_v21, 2  ;;  %v880_v29 = vadd.f32 %v879_v27, %v878_v56  ;;  %v872_v23 = vrot.slane %v871_v60, 2  ;;  %v1178_v46 = vld [vmem:[%s2084_s1 + $0x160] sm:$0xf]  ;;  %v1176_v56 = vld [vmem:[%s2084_s1 + $0x150] sm:$0xff] }
 0x4ac   : > { %1363 = vmatpush.msk.msra.mxu0 %vm445_vm4, %v1178_v46  ;;  %vm2104_vm4 = vcmask 1041408  }
 0x4ad   : > { %v758_v15 = vrot.slane %v757_v13, 1  ;;  %v766_v61 = vadd.f32 %v765_v52, %v764_v21  ;;  %v881_v19 = vrot.slane %v880_v29, 2  ;;  %v873_v12 = vadd.f32 %v872_v23, %v871_v60  ;;  %v1177_v21 = vld [vmem:[%s2084_s1 + $0x158] sm:$0xff] }
 0x4ae   : > { %1202 = vmatpush.msra.mxu0 %v1177_v21  ;;  %v1475_v60 = vmov 0  }
 0x4af   : > { %v759_v47 = vadd.f32 %v758_v15, %v757_v13  ;;  %v767_v49 = vrot.slane %v766_v61, 1  ;;  %v882_v30 = vadd.f32 %v881_v19, %v880_v29  ;;  %v874_v9 = vrot.slane %v873_v12, 1  ;;  %v1396_v13 = vld [vmem:[%s2084_s1 + $0x148] ss:$0 sm:$0xff]  ;;  %1389 = vset.pattern.permute.xlu1 %v1475_v60  ;;  %1390 = vset.pattern.permute.xlu0 %v1475_v60 }
 0x4b0   : > { %1203 = vmatpush.msra.mxu0 %v1176_v56  ;;  %v1397_v19 = vld [vmem:[%s2084_s1 + $0x168] ss:$0 sm:$0xff] }
 0x4b1   : > { %v768_v35 = vadd.f32 %v767_v49, %v766_v61  ;;  %1454 = vrcp.f32 %v759_v47  ;;  %v1016_v31 = vand.u32 2147483648, %v759_v47  ;;  %v1014_v32 = vand.u32 2147483647, %v759_v47  ;;  %v1218_v49 = vld [vmem:[%s2084_s1 + $0x178] sm:$0x3] }
 0x4b2   : > { %v883_v42 = vrot.slane %v882_v30, 1  ;;  %vm1010_vm9 = vweird.f32 %v759_v47  ;;  %v875_v39 = vadd.f32 %v874_v9, %v873_v12  ;;  %1221 = vperm.xlu1 %1389, %v1218_v49  }
 0x4b3   : > { %1456 = vrcp.f32 %v768_v35  ;;  %v1031_v43 = vand.u32 2147483648, %v768_v35  ;;  %v1029_v48 = vand.u32 2147483647, %v768_v35  ;;  %v1017_v45 = vor.u32 1.1754944e-38, %v1016_v31 }
 0x4b4   : > { %vm1015_vm13 = vcmp.eq.f32.partialorder %v1014_v32, 8.507059e+37  ;;  %vm1025_vm2 = vweird.f32 %v768_v35  ;;  %v884_v1 = vadd.f32 %v883_v42, %v882_v30 }
 0x4b5   : > { %v1032_v41 = vor.u32 1.1754944e-38, %v1031_v43  ;;  %vm1030_vm15 = vcmp.eq.f32.partialorder %v1029_v48, 8.507059e+37 }
 0x4b7   : > { %v1455_v24 = vpop.eup %1454 }
 0x4b8   : > { %v1006_v5 = vmul.f32 %v1455_v24, %v759_v47  ;;  %vm1011_vm8 = vweird.f32 %v1455_v24 }
 0x4b9   : > { %v1457_v26 = vpop.eup %1456  ;;  %vm1012_vm0 = vmor %vm1010_vm9, %vm1011_vm8 }
 0x4ba   : > { %v1007_v50 = vsub.f32 1.0, %v1006_v5  ;;  %v1021_v28 = vmul.f32 %v1457_v26, %v768_v35  ;;  %vm1026_vm12 = vweird.f32 %v1457_v26 }
 0x4bb   : > { %vm1027_vm14 = vmor %vm1025_vm2, %vm1026_vm12 }
 0x4bc   : > { %v1008_v54 = vmul.f32 %v1455_v24, %v1007_v50  ;;  %v1022_v10 = vsub.f32 1.0, %v1021_v28 }
 0x4be   : > { %v1009_v57 = vadd.f32 %v1455_v24, %v1008_v54  ;;  %v1023_v34 = vmul.f32 %v1457_v26, %v1022_v10 }
 0x4c0   : > { %v1013_v4 = vsel %vm1012_vm0, %v1455_v24, %v1009_v57  ;;  %v1024_v51 = vadd.f32 %v1457_v26, %v1023_v34 }
 0x4c1   : > { %v1018_v37 = vsel %vm1015_vm13, %v1017_v45, %v1013_v4 }
 0x4c2   : > { %v1019_v3 = vmul.f32 %v1018_v37, %v875_v39  ;;  %v1028_v63 = vsel %vm1027_vm14, %v1457_v26, %v1024_v51  ;;  %v1217_v26 = vld [vmem:[%s2084_s1 + $0x170] sm:$0x3] }
 0x4c3   : > { %v1033_v0 = vsel %vm1030_vm15, %v1032_v41, %v1028_v63 }
 0x4c4   : > { %v1034_v40 = vmul.f32 %v1033_v0, %v884_v1 }
 0x4c6   : > { %v1062_v8 = vsel %vm1048_vm3, %v1034_v40, %v1019_v3  ;;  %vm1140_vm3 = vcmask 261120  }
 0x4c7   : > { %1357 = vmatmul.msk.f32.gmra.mxu1 %vm438_vm5, %v1062_v8 }
 0x510   : > { %v1087_v55 = vpop.f32.mrf.mxu1 }
 0x511   : > { %v1093_v44 = vadd.f32 %v1087_v55, %v1629_v7  ;;  %v1137_v7 = vld [vmem:[%s2084_s1 + $0x130] sm:$0xff] }
 0x512   : > { %1161 = vmatpush.msra.mxu3 %v1137_v7 }
 0x513   : > { %v1097_v6 = vadd.f32 %v1394_v36, %v1093_v44 }
 0x514   : > { %1162 = vmatpush.msra.mxu3 %v1136_v18 }
 0x515   : > { %1359 = vmatmul.msk.f32.vlgmr.msrb.gmra.mxu2 %vm438_vm5, %v1097_v6 }
 0x524   : > { %v1222_v30 = vpop.permute.xlu1 %1221 }
 0x544   : > { %v1090_v38 = vpop.f32.mrf.mxu1 }
 0x545   : > { %v1094_v53 = vadd.f32 %v1090_v38, %v1619_v2 }
 0x547   : > { %v1098_v16 = vadd.f32 %v1394_v36, %v1094_v53 }
 0x549   : > { %1360 = vmatmul.msk.f32.gmra.mxu2 %vm438_vm5, %v1098_v16 }
 0x598   : > { %v1130_v17 = vpop.f32.mrf.mxu2 }
 0x599   : > { %v1131_v2 = vadd.f32 %v1395_v62, %v1130_v17 }
 0x59b   : > { %1361 = vmatmul.msk.f32.vlgmr.msra.gmra.mxu3 %vm1140_vm3, %v1131_v2 }
 0x5cc   : > { %v1133_v20 = vpop.f32.mrf.mxu2 }
 0x5cd   : > { %v1134_v22 = vadd.f32 %v1395_v62, %v1133_v20 }
 0x5cf   : > { %1362 = vmatmul.msk.f32.gmra.mxu3 %vm1140_vm3, %v1134_v22 }
 0x61e   : > { %v1164_v52 = vpop.f32.mrf.mxu3 }
 0x61f   : > { %v1170_v11 = vadd.f32 %v1164_v52, %v1097_v6 }
 0x621   : > { %v1174_v15 = vadd.f32 %v1396_v13, %v1170_v11 }
 0x623   : > { %1364 = vmatmul.msk.f32.vlgmr.msra.gmra.mxu0 %vm438_vm5, %v1174_v15 }
 0x652   : > { %v1167_v61 = vpop.f32.mrf.mxu3 }
 0x653   : > { %v1171_v27 = vadd.f32 %v1167_v61, %v1098_v16 }
 0x655   : > { %v1175_v47 = vadd.f32 %v1396_v13, %v1171_v27 }
 0x657   : > { %1365 = vmatmul.msk.f32.gmra.mxu0 %vm438_vm5, %v1175_v47  ;;  %vm2105_vm5 = vcmask 80896  }
 0x6a0   : > { %v1205_v35 = vpop.f32.mrf.mxu0 }
 0x6a1   : > { %v1211_v23 = vadd.f32 %v1205_v35, %v1174_v15 }
 0x6a3   : > { %v1215_v5 = vadd.f32 %v1397_v19, %v1211_v23 }
 0x6d4   : > { %v1208_v29 = vpop.f32.mrf.mxu0 }
 0x6d5   : > { %v1212_v24 = vadd.f32 %v1208_v29, %v1175_v47 }
 0x6d7   : > { %v1216_v12 = vadd.f32 %v1397_v19, %v1212_v24 }
 0x6d9   : > { %1366 = vmatpush.msk.msrb.mxu1 %vm2104_vm4, %v1216_v12 }
 0x6db   : > { %1245 = vmatpush.msrb.mxu1 %v1215_v5 }
 0x6dc   : > { %1367 = vmatmul.msk.f32.vlgmr.msrb.gmra.mxu1 %vm2105_vm5, %v1217_v26 }
 0x759   : > { %v1247_v50 = vpop.f32.mrf.mxu1 }
 0x75a   : > { %v1248_v28 = vadd.f32 %v1247_v50, %v1222_v30 }
 0x75c   : > { %v1368_v9 = vmul.f32 -1.442695, %v1248_v28 }
 0x75e   : > { %1458 = vpow2.f32 %v1368_v9 }
 0x764   : > { %v1459_v31 = vpop.eup %1458 }
 0x765   : > { %v1253_v54 = vadd.f32 1.0, %v1459_v31 }
 0x767   : > { %1460 = vrcp.f32 %v1253_v54  ;;  %v1265_v43 = vand.u32 2147483648, %v1253_v54  ;;  %v1263_v34 = vand.u32 2147483647, %v1253_v54  ;;  %vm1259_vm10 = vweird.f32 %v1253_v54 }
 0x769   : > { %v1266_v39 = vor.u32 1.1754944e-38, %v1265_v43  ;;  %vm1264_vm11 = vcmp.eq.f32.partialorder %v1263_v34, 8.507059e+37 }
 0x76d   : > { %v1461_v32 = vpop.eup %1460 }
 0x76e   : > { %v1255_v10 = vmul.f32 %v1461_v32, %v1253_v54  ;;  %vm1260_vm1 = vweird.f32 %v1461_v32 }
 0x76f   : > { %vm1261_vm7 = vmor %vm1259_vm10, %vm1260_vm1 }
 0x770   : > { %v1256_v42 = vsub.f32 1.0, %v1255_v10 }
 0x772   : > { %v1257_v57 = vmul.f32 %v1461_v32, %v1256_v42 }
 0x774   : > { %v1258_v48 = vadd.f32 %v1461_v32, %v1257_v57 }
 0x776   : > { %v1262_v45 = vsel %vm1261_vm7, %v1461_v32, %v1258_v48 }
 0x777   : > { %v1267_v4 = vsel %vm1264_vm11, %v1266_v39, %v1262_v45 }
 0x778   : > { %1269 = vst.msk [vmem:[%s141_s15] sm:$0x3] %vm529_vm6, %v1267_v4 }
 0x779 PF: > { %s12_s9 = sadd.s32 1, %s1468_s9  }
 0x77a   : > { %p9_p4 = scmp.ge.s32.totalorder %s12_s9, 4  }
 0x77c   :  { %11 = sbr.rel (!%p9_p4) target bundleno = 1 (0x1), region = 58 }

</bundles_post_ra>
